<compile_context>
chip_gen: v6e
topology: v6e:2x2x1
jax: 0.10.0
libtpu: 0.0.40
codegen_flags: <defaults>
</compile_context>

<pallas_src>
import math
from functools import partial

import jax
import jax.numpy as jnp
from jax.experimental import pallas as pl
from jax.experimental.pallas import tpu as pltpu


def _round_up(x, m):
    return ((x + m - 1) // m) * m


# ----------------------------------------------------------------------------
# Fused conv + BN-batch-statistics kernel
# ----------------------------------------------------------------------------

def _conv_tap_kernel(*refs, nplanes, row_plan, wo):
    """One grid step computes one output row (all wo columns, all Cout).

    refs = (plane_0 .. plane_{nplanes-1}, w, out, ch_sum, ch_sumsq)
      plane_p : (1, Hp_p, Wp_p, Cin) bf16   full (parity) input plane, resident
      w       : (KH*KW, Cin, Cout)   bf16   all tap weights, resident
      out     : (1, 1, wo, Cout)     bf16   this (batch, out_row) tile
      ch_sum  : (1, 1, Cout)         f32    per-batch channel sums    (resident)
      ch_sumsq: (1, 1, Cout)         f32    per-batch channel sum-sq  (resident)
    """
    plane_refs = refs[:nplanes]
    w_ref = refs[nplanes]
    o_ref, sum_ref, sq_ref = refs[nplanes + 1:]

    oh = pl.program_id(1)

    acc = None
    # row_plan groups taps by (plane, row-offset): each needed input row is
    # loaded from VMEM exactly once per step.
    for pidx, dh, taps in row_plan:
        row = plane_refs[pidx][0, oh + dh]                      # (Wp, Cin) bf16
        # W-offset slicing is done on an f32 copy (32-bit sublane shifts are
        # the safe/cheap relayout path); bf16 -> f32 -> bf16 is exact.
        rowf = row.astype(jnp.float32)
        for t, dw in taps:
            slab = rowf[dw:dw + wo, :].astype(jnp.bfloat16)     # (wo, Cin)
            part = jnp.dot(slab, w_ref[t],
                           preferred_element_type=jnp.float32)  # (wo, Cout)
            acc = part if acc is None else acc + part

    o_ref[0, 0] = acc.astype(o_ref.dtype)

    # BatchNorm batch statistics, fused into the conv epilogue.
    @pl.when(oh == 0)
    def _init_stats():
        sum_ref[...] = jnp.zeros_like(sum_ref)
        sq_ref[...] = jnp.zeros_like(sq_ref)

    sum_ref[0] += jnp.sum(acc, axis=0, keepdims=True)
    sq_ref[0] += jnp.sum(acc * acc, axis=0, keepdims=True)


def conv2d_bn_stats(x_nhwc, w, stride, padding):
    """Conv2d (no bias) + per-channel batch statistics.

    x_nhwc: (N, H, W, Cin), w: (KH, KW, Cin, Cout).
    Returns (out (N, HO, WO, Cout) bf16, mean (1, Cout) f32, var (1, Cout) f32).
    """
    n, h, wdt, cin = x_nhwc.shape
    kh, kw, cin2, cout = w.shape
    assert cin == cin2
    s = stride

    x = x_nhwc.astype(jnp.bfloat16)
    if padding:
        xp = jnp.pad(x, ((0, 0), (padding, padding), (padding, padding), (0, 0)))
    else:
        xp = x
    ho = (h + 2 * padding - kh) // s + 1
    wo = (wdt + 2 * padding - kw) // s + 1

    # Parity-split the padded input (for stride>1) so every tap becomes a
    # contiguous slice; ~1x copy instead of kh*kw x for im2col.
    planes = {}
    for ih in range(kh):
        for iw in range(kw):
            key = (ih % s, iw % s)
            if key not in planes:
                ph, pw = key
                planes[key] = xp if s == 1 else xp[:, ph::s, pw::s, :]
    plane_keys = sorted(planes)
    plane_list = [planes[k] for k in plane_keys]
    key_to_idx = {k: i for i, k in enumerate(plane_keys)}

    # Group taps by (plane, row offset).
    row_groups = {}
    for ih in range(kh):
        for iw in range(kw):
            t = ih * kw + iw
            g = (key_to_idx[(ih % s, iw % s)], ih // s)
            row_groups.setdefault(g, []).append((t, iw // s))
    row_plan = tuple((p, dh, tuple(tws))
                     for (p, dh), tws in sorted(row_groups.items()))

    w3 = w.astype(jnp.bfloat16).reshape(kh * kw, cin, cout)

    in_specs = [pl.BlockSpec((1,) + p.shape[1:], lambda b, i: (b, 0, 0, 0))
                for p in plane_list]
    in_specs.append(pl.BlockSpec(w3.shape, lambda b, i: (0, 0, 0)))
    out_specs = [
        pl.BlockSpec((1, 1, wo, cout), lambda b, i: (b, i, 0, 0)),
        pl.BlockSpec((1, 1, cout), lambda b, i: (b, 0, 0)),
        pl.BlockSpec((1, 1, cout), lambda b, i: (b, 0, 0)),
    ]

    out, sums, sqs = pl.pallas_call(
        partial(_conv_tap_kernel, nplanes=len(plane_list),
                row_plan=row_plan, wo=wo),
        out_shape=(jax.ShapeDtypeStruct((n, ho, wo, cout), jnp.bfloat16),
                   jax.ShapeDtypeStruct((n, 1, cout), jnp.float32),
                   jax.ShapeDtypeStruct((n, 1, cout), jnp.float32)),
        grid_spec=pltpu.PrefetchScalarGridSpec(
            num_scalar_prefetch=0,
            grid=(n, ho),
            in_specs=in_specs,
            out_specs=out_specs),
        compiler_params=pltpu.CompilerParams(
            dimension_semantics=("parallel", "arbitrary"),
            # Headroom below v7x's 64 MiB physical VMEM; plenty on v5e/v6e.
            vmem_limit_bytes=48 * 1024 * 1024),
    )(*plane_list, w3)

    m = float(n * ho * wo)
    mean = jnp.sum(sums, axis=0) / m                     # (1, Cout)
    var = jnp.sum(sqs, axis=0) / m - mean * mean         # biased (like F.batch_norm)
    return out, mean, var


# ----------------------------------------------------------------------------
# Lane-dense elementwise kernels: BN apply (+ReLU), fused BN2 + add + ReLU
# ----------------------------------------------------------------------------

def _bn_scale_bias(gamma, beta, mean, var, eps=1e-5):
    inv = jax.lax.rsqrt(var + eps)
    scale = gamma * inv
    bias = beta - mean * scale
    return scale, bias


def _scale_act_kernel(x_ref, s_ref, b_ref, o_ref, *, relu):
    y = x_ref[...].astype(jnp.float32) * s_ref[...] + b_ref[...]
    if relu:
        y = jnp.maximum(y, 0.0)
    o_ref[...] = y.astype(o_ref.dtype)


def _scale2_add_relu_kernel(x_ref, sx_ref, bx_ref, y_ref, sy_ref, by_ref, o_ref):
    o_ref[...] = jnp.maximum(
        x_ref[...].astype(jnp.float32) * sx_ref[...] + bx_ref[...]
        + y_ref[...].astype(jnp.float32) * sy_ref[...] + by_ref[...],
        0.0).astype(o_ref.dtype)


def _pick_rows_tile(rows, lane, target_bytes=2 * 1024 * 1024, itemsize=2):
    """Row tile: multiple of 8, divides the 8-rounded row count, and capped so
    a (tr, lane) bf16 block stays <= ~target_bytes (v7x VMEM friendly)."""
    rows8 = _round_up(rows, 8)
    cap = max(8, min(rows8, (target_bytes // max(1, lane * itemsize)) // 8 * 8))
    tr = 8
    cand = cap
    while cand >= 8:
        if rows8 % cand == 0:
            tr = cand
            break
        cand -= 8
    return rows8, tr


def bn_act(x_nhwc, gamma, beta, mean, var, relu=True, eps=1e-5):
    """BatchNorm (batch stats) + optional ReLU; lane-dense over (N*H, W*C)."""
    scale, bias = _bn_scale_bias(gamma, beta, mean, var, eps)
    n, h, w, c = x_nhwc.shape
    rows, lane = n * h, w * c
    x2 = x_nhwc.reshape(rows, lane)
    s2 = jnp.tile(scale, (1, w))
    b2 = jnp.tile(bias, (1, w))

    rows_p, tr = _pick_rows_tile(rows, lane)
    if rows_p != rows:
        x2 = jnp.pad(x2, ((0, rows_p - rows), (0, 0)))
    row_spec = pl.BlockSpec((tr, lane), lambda i: (i, 0))
    vec_spec = pl.BlockSpec((1, lane), lambda i: (0, 0))
    out = pl.pallas_call(
        partial(_scale_act_kernel, relu=relu),
        out_shape=jax.ShapeDtypeStruct((rows_p, lane), jnp.bfloat16),
        grid_spec=pltpu.PrefetchScalarGridSpec(
            num_scalar_prefetch=0, grid=(rows_p // tr,),
            in_specs=[row_spec, vec_spec, vec_spec],
            out_specs=row_spec),
        compiler_params=pltpu.CompilerParams(
            dimension_semantics=("parallel",)),
    )(x2, s2, b2)
    return out[:rows].reshape(n, h, w, c)


def bn_add_relu(main, g_main, b_main, m_main, v_main, ident, scale_id, bias_id,
                eps=1e-5):
    """relu( BN(main) + scale_id*ident + bias_id ); lane-dense, bf16 out."""
    sm, bm = _bn_scale_bias(g_main, b_main, m_main, v_main, eps)
    n, h, w, c = main.shape
    rows, lane = n * h, w * c
    m2 = main.reshape(rows, lane)
    i2 = ident.astype(jnp.bfloat16).reshape(rows, lane)
    smw = jnp.tile(sm, (1, w))
    bmw = jnp.tile(bm, (1, w))
    siw = jnp.tile(scale_id, (1, w))
    biw = jnp.tile(bias_id, (1, w))

    rows_p, tr = _pick_rows_tile(rows, lane)
    if rows_p != rows:
        m2 = jnp.pad(m2, ((0, rows_p - rows), (0, 0)))
        i2 = jnp.pad(i2, ((0, rows_p - rows), (0, 0)))
    row_spec = pl.BlockSpec((tr, lane), lambda i: (i, 0))
    vec_spec = pl.BlockSpec((1, lane), lambda i: (0, 0))
    out = pl.pallas_call(
        _scale2_add_relu_kernel,
        out_shape=jax.ShapeDtypeStruct((rows_p, lane), jnp.bfloat16),
        grid_spec=pltpu.PrefetchScalarGridSpec(
            num_scalar_prefetch=0, grid=(rows_p // tr,),
            in_specs=[row_spec, vec_spec, vec_spec,
                      row_spec, vec_spec, vec_spec],
            out_specs=row_spec),
        compiler_params=pltpu.CompilerParams(
            dimension_semantics=("parallel",)),
    )(m2, smw, bmw, i2, siw, biw)
    return out[:rows].reshape(n, h, w, c)


# ----------------------------------------------------------------------------
# MaxPool 3x3 stride 2 pad 1 — parity planes, single read, bf16 I/O
# ----------------------------------------------------------------------------

def _maxpool9_kernel(p00_ref, p01_ref, p10_ref, p11_ref, o_ref, *, ho, wo):
    planes = {(0, 0): p00_ref, (0, 1): p01_ref,
              (1, 0): p10_ref, (1, 1): p11_ref}
    vals = {k: r[0].astype(jnp.float32) for k, r in planes.items()}
    acc = None
    for kh in range(3):
        for kw in range(3):
            v = vals[(kh % 2, kw % 2)]
            hs, ws = kh // 2, kw // 2
            tap = v[hs:hs + ho, ws:ws + wo, :]
            acc = tap if acc is None else jnp.maximum(acc, tap)
    o_ref[0] = acc.astype(o_ref.dtype)


def maxpool_3x3_s2_p1(x):
    n, h, w, c = x.shape
    neg = float(jnp.finfo(jnp.bfloat16).min)
    xp = jnp.pad(x.astype(jnp.bfloat16),
                 ((0, 0), (1, 1), (1, 1), (0, 0)), constant_values=neg)
    ho = (h + 2 - 3) // 2 + 1
    wo = (w + 2 - 3) // 2 + 1
    planes = [xp[:, ph::2, pw::2, :] for ph in range(2) for pw in range(2)]
    in_specs = [pl.BlockSpec((1,) + p.shape[1:], lambda i: (i, 0, 0, 0))
                for p in planes]
    out = pl.pallas_call(
        partial(_maxpool9_kernel, ho=ho, wo=wo),
        out_shape=jax.ShapeDtypeStruct((n, ho, wo, c), jnp.bfloat16),
        grid_spec=pltpu.PrefetchScalarGridSpec(
            num_scalar_prefetch=0, grid=(n,),
            in_specs=in_specs,
            out_specs=pl.BlockSpec((1, ho, wo, c), lambda i: (i, 0, 0, 0))),
        compiler_params=pltpu.CompilerParams(
            dimension_semantics=("parallel",)),
    )(*planes)
    return out


# ----------------------------------------------------------------------------
# Global average pool
# ----------------------------------------------------------------------------

def _global_avgpool_kernel(x_ref, o_ref):
    o_ref[...] = jnp.mean(x_ref[...].astype(jnp.float32), axis=1, keepdims=True)


def global_avgpool(x_nhwc):
    n, h, w, c = x_nhwc.shape
    x3 = x_nhwc.reshape(n, h * w, c)
    out = pl.pallas_call(
        _global_avgpool_kernel,
        out_shape=jax.ShapeDtypeStruct((n, 1, c), jnp.float32),
        grid_spec=pltpu.PrefetchScalarGridSpec(
            num_scalar_prefetch=0, grid=(n,),
            in_specs=[pl.BlockSpec((1, h * w, c), lambda i: (i, 0, 0))],
            out_specs=pl.BlockSpec((1, 1, c), lambda i: (i, 0, 0))),
        compiler_params=pltpu.CompilerParams(
            dimension_semantics=("parallel",)),
    )(x3)
    return out.reshape(n, c)


# ----------------------------------------------------------------------------
# ResNetFast model (BasicBlock, expansion = 1)
# ----------------------------------------------------------------------------

def init_resnet_params(key, layers=(1, 1, 1, 1)):
    keys = iter(jax.random.split(key, 256))

    def conv_w(cout, cin, k):
        # kaiming_normal_(mode='fan_out', nonlinearity='relu')
        fan_out = cout * k * k
        std = math.sqrt(2.0 / fan_out)
        return jax.random.normal(next(keys), (k, k, cin, cout), jnp.float32) * std

    def bn(c):
        return jnp.ones((1, c), jnp.float32), jnp.zeros((1, c), jnp.float32)

    params = {'conv1_w': conv_w(64, 3, 7)}
    params['bn1_g'], params['bn1_b'] = bn(64)

    inplanes = 64
    all_layers = []
    for planes, nblocks, stride in zip((64, 128, 256, 512), layers, (1, 2, 2, 2)):
        blocks = []
        for bi in range(nblocks):
            s = stride if bi == 0 else 1
            blk = {'stride': s,
                   'conv1_w': conv_w(planes, inplanes, 3),
                   'conv2_w': conv_w(planes, planes, 3)}
            blk['bn1_g'], blk['bn1_b'] = bn(planes)
            blk['bn2_g'], blk['bn2_b'] = bn(planes)
            if s != 1 or inplanes != planes:
                blk['down_conv_w'] = conv_w(planes, inplanes, 1)
                blk['down_bn_g'], blk['down_bn_b'] = bn(planes)
            blocks.append(blk)
            inplanes = planes
        all_layers.append(blocks)
    params['layers'] = all_layers
    return params


def basic_block(x, blk):
    out, m1, v1 = conv2d_bn_stats(x, blk['conv1_w'],
                                  stride=blk['stride'], padding=1)
    out = bn_act(out, blk['bn1_g'], blk['bn1_b'], m1, v1, relu=True)
    out, m2, v2 = conv2d_bn_stats(out, blk['conv2_w'], stride=1, padding=1)
    if 'down_conv_w' in blk:
        ident, md, vd = conv2d_bn_stats(x, blk['down_conv_w'],
                                        stride=blk['stride'], padding=0)
        s_id, b_id = _bn_scale_bias(blk['down_bn_g'], blk['down_bn_b'], md, vd)
    else:
        ident = x
        c = out.shape[-1]
        s_id = jnp.ones((1, c), jnp.float32)
        b_id = jnp.zeros((1, c), jnp.float32)
    # bn2 (+ downsample-bn) + residual add + ReLU fused in one lane-dense kernel.
    return bn_add_relu(out, blk['bn2_g'], blk['bn2_b'], m2, v2, ident, s_id, b_id)


def resnet_fast_forward(x_nchw, params):
    # x_nchw: (N, 3, H, W) f32 (PyTorch layout); output: (N, 512) f32
    x = jnp.transpose(x_nchw, (0, 2, 3, 1))                 # NCHW -> NHWC
    out, m, v = conv2d_bn_stats(x, params['conv1_w'], stride=2, padding=3)
    x = bn_act(out, params['bn1_g'], params['bn1_b'], m, v, relu=True)
    x = maxpool_3x3_s2_p1(x)
    for blocks in params['layers']:
        for blk in blocks:
            x = basic_block(x, blk)
    return global_avgpool(x)                                # == flatten(avgpool)


if __name__ == "__main__":
    key = jax.random.PRNGKey(0)
    pkey, xkey = jax.random.split(key)
    params = init_resnet_params(pkey, layers=(1, 1, 1, 1))
    x = jax.random.normal(xkey, (2, 3, 16, 16), jnp.float32)
    out = resnet_fast_forward(x, params)
    out = jax.block_until_ready(out)
    assert out.shape == (2, 512), out.shape
    assert bool(jnp.all(jnp.isfinite(out)))
    print("KERNEL_OK")
</pallas_src>

<mosaic_0001>
module attributes {stable_mosaic.version = 11 : i64} {
  func.func @_conv_tap_kernel(%arg0: i32, %arg1: i32, %arg2: memref<1x11x11x3xbf16, #tpu.memory_space<vmem>>, %arg3: memref<1x11x11x3xbf16, #tpu.memory_space<vmem>>, %arg4: memref<1x11x11x3xbf16, #tpu.memory_space<vmem>>, %arg5: memref<1x11x11x3xbf16, #tpu.memory_space<vmem>>, %arg6: memref<49x3x64xbf16, #tpu.memory_space<vmem>>, %arg7: memref<1x1x8x64xbf16, #tpu.memory_space<vmem>>, %arg8: memref<1x1x64xf32, #tpu.memory_space<vmem>>, %arg9: memref<1x1x64xf32, #tpu.memory_space<vmem>>) attributes {dimension_semantics = [#tpu.dimension_semantics<parallel>, #tpu.dimension_semantics<arbitrary>], iteration_bounds = array<i64: 2, 8>, scalar_prefetch = 0 : i64, scratch_operands = 0 : i64, tpu.core_type = #tpu.core_type<tc>, window_params = [{transform_indices = @transform_0, window_bounds = array<i64: 1, 11, 11, 3>}, {transform_indices = @transform_1, window_bounds = array<i64: 1, 11, 11, 3>}, {transform_indices = @transform_2, window_bounds = array<i64: 1, 11, 11, 3>}, {transform_indices = @transform_3, window_bounds = array<i64: 1, 11, 11, 3>}, {pipeline_mode = #tpu.pipeline_mode<synchronous>, transform_indices = @transform_4, window_bounds = array<i64: 49, 3, 64>}, {transform_indices = @transform_5, window_bounds = array<i64: 1, 1, 8, 64>}, {transform_indices = @transform_6, window_bounds = array<i64: 1, 1, 64>}, {transform_indices = @transform_7, window_bounds = array<i64: 1, 1, 64>}]} {
    %c0_i32 = arith.constant 0 : i32
    %0 = arith.addi %arg1, %c0_i32 : i32
    %c0 = arith.constant 0 : index
    %1 = arith.index_cast %0 : i32 to index
    %c0_0 = arith.constant 0 : index
    %c0_1 = arith.constant 0 : index
    %2 = vector.load %arg2[%c0, %1, %c0_0, %c0_1] : memref<1x11x11x3xbf16, #tpu.memory_space<vmem>>, vector<1x1x11x3xbf16>
    %3 = vector.shape_cast %2 : vector<1x1x11x3xbf16> to vector<11x3xbf16>
    %4 = arith.extf %3 : vector<11x3xbf16> to vector<11x3xf32>
    %5 = vector.extract_strided_slice %4 {offsets = [0, 0], sizes = [8, 3], strides = [1, 1]} : vector<11x3xf32> to vector<8x3xf32>
    %6 = arith.truncf %5 : vector<8x3xf32> to vector<8x3xbf16>
    %c0_2 = arith.constant 0 : index
    %c0_3 = arith.constant 0 : index
    %c0_4 = arith.constant 0 : index
    %7 = vector.load %arg6[%c0_2, %c0_3, %c0_4] : memref<49x3x64xbf16, #tpu.memory_space<vmem>>, vector<1x3x64xbf16>
    %8 = vector.shape_cast %7 : vector<1x3x64xbf16> to vector<3x64xbf16>
    %cst = arith.constant dense<0.000000e+00> : vector<8x64xf32>
    %9 = tpu.matmul %6, %8, %cst {dimension_numbers = #tpu.dot_dimension_numbers<[1], [0], [0], [1], [0, 0, 1, 1], [], []>} : vector<8x3xbf16>, vector<3x64xbf16>, vector<8x64xf32> -> vector<8x64xf32>
    %10 = vector.extract_strided_slice %4 {offsets = [1, 0], sizes = [8, 3], strides = [1, 1]} : vector<11x3xf32> to vector<8x3xf32>
    %11 = arith.truncf %10 : vector<8x3xf32> to vector<8x3xbf16>
    %c2 = arith.constant 2 : index
    %c0_5 = arith.constant 0 : index
    %c0_6 = arith.constant 0 : index
    %12 = vector.load %arg6[%c2, %c0_5, %c0_6] : memref<49x3x64xbf16, #tpu.memory_space<vmem>>, vector<1x3x64xbf16>
    %13 = vector.shape_cast %12 : vector<1x3x64xbf16> to vector<3x64xbf16>
    %cst_7 = arith.constant dense<0.000000e+00> : vector<8x64xf32>
    %14 = tpu.matmul %11, %13, %cst_7 {dimension_numbers = #tpu.dot_dimension_numbers<[1], [0], [0], [1], [0, 0, 1, 1], [], []>} : vector<8x3xbf16>, vector<3x64xbf16>, vector<8x64xf32> -> vector<8x64xf32>
    %15 = arith.addf %9, %14 : vector<8x64xf32>
    %16 = vector.extract_strided_slice %4 {offsets = [2, 0], sizes = [8, 3], strides = [1, 1]} : vector<11x3xf32> to vector<8x3xf32>
    %17 = arith.truncf %16 : vector<8x3xf32> to vector<8x3xbf16>
    %c4 = arith.constant 4 : index
    %c0_8 = arith.constant 0 : index
    %c0_9 = arith.constant 0 : index
    %18 = vector.load %arg6[%c4, %c0_8, %c0_9] : memref<49x3x64xbf16, #tpu.memory_space<vmem>>, vector<1x3x64xbf16>
    %19 = vector.shape_cast %18 : vector<1x3x64xbf16> to vector<3x64xbf16>
    %cst_10 = arith.constant dense<0.000000e+00> : vector<8x64xf32>
    %20 = tpu.matmul %17, %19, %cst_10 {dimension_numbers = #tpu.dot_dimension_numbers<[1], [0], [0], [1], [0, 0, 1, 1], [], []>} : vector<8x3xbf16>, vector<3x64xbf16>, vector<8x64xf32> -> vector<8x64xf32>
    %21 = arith.addf %15, %20 : vector<8x64xf32>
    %22 = vector.extract_strided_slice %4 {offsets = [3, 0], sizes = [8, 3], strides = [1, 1]} : vector<11x3xf32> to vector<8x3xf32>
    %23 = arith.truncf %22 : vector<8x3xf32> to vector<8x3xbf16>
    %c6 = arith.constant 6 : index
    %c0_11 = arith.constant 0 : index
    %c0_12 = arith.constant 0 : index
    %24 = vector.load %arg6[%c6, %c0_11, %c0_12] : memref<49x3x64xbf16, #tpu.memory_space<vmem>>, vector<1x3x64xbf16>
    %25 = vector.shape_cast %24 : vector<1x3x64xbf16> to vector<3x64xbf16>
    %cst_13 = arith.constant dense<0.000000e+00> : vector<8x64xf32>
    %26 = tpu.matmul %23, %25, %cst_13 {dimension_numbers = #tpu.dot_dimension_numbers<[1], [0], [0], [1], [0, 0, 1, 1], [], []>} : vector<8x3xbf16>, vector<3x64xbf16>, vector<8x64xf32> -> vector<8x64xf32>
    %27 = arith.addf %21, %26 : vector<8x64xf32>
    %c1_i32 = arith.constant 1 : i32
    %28 = arith.addi %arg1, %c1_i32 : i32
    %c0_14 = arith.constant 0 : index
    %29 = arith.index_cast %28 : i32 to index
    %c0_15 = arith.constant 0 : index
    %c0_16 = arith.constant 0 : index
    %30 = vector.load %arg2[%c0_14, %29, %c0_15, %c0_16] : memref<1x11x11x3xbf16, #tpu.memory_space<vmem>>, vector<1x1x11x3xbf16>
    %31 = vector.shape_cast %30 : vector<1x1x11x3xbf16> to vector<11x3xbf16>
    %32 = arith.extf %31 : vector<11x3xbf16> to vector<11x3xf32>
    %33 = vector.extract_strided_slice %32 {offsets = [0, 0], sizes = [8, 3], strides = [1, 1]} : vector<11x3xf32> to vector<8x3xf32>
    %34 = arith.truncf %33 : vector<8x3xf32> to vector<8x3xbf16>
    %c14 = arith.constant 14 : index
    %c0_17 = arith.constant 0 : index
    %c0_18 = arith.constant 0 : index
    %35 = vector.load %arg6[%c14, %c0_17, %c0_18] : memref<49x3x64xbf16, #tpu.memory_space<vmem>>, vector<1x3x64xbf16>
    %36 = vector.shape_cast %35 : vector<1x3x64xbf16> to vector<3x64xbf16>
    %cst_19 = arith.constant dense<0.000000e+00> : vector<8x64xf32>
    %37 = tpu.matmul %34, %36, %cst_19 {dimension_numbers = #tpu.dot_dimension_numbers<[1], [0], [0], [1], [0, 0, 1, 1], [], []>} : vector<8x3xbf16>, vector<3x64xbf16>, vector<8x64xf32> -> vector<8x64xf32>
    %38 = arith.addf %27, %37 : vector<8x64xf32>
    %39 = vector.extract_strided_slice %32 {offsets = [1, 0], sizes = [8, 3], strides = [1, 1]} : vector<11x3xf32> to vector<8x3xf32>
    %40 = arith.truncf %39 : vector<8x3xf32> to vector<8x3xbf16>
    %c16 = arith.constant 16 : index
    %c0_20 = arith.constant 0 : index
    %c0_21 = arith.constant 0 : index
    %41 = vector.load %arg6[%c16, %c0_20, %c0_21] : memref<49x3x64xbf16, #tpu.memory_space<vmem>>, vector<1x3x64xbf16>
    %42 = vector.shape_cast %41 : vector<1x3x64xbf16> to vector<3x64xbf16>
    %cst_22 = arith.constant dense<0.000000e+00> : vector<8x64xf32>
    %43 = tpu.matmul %40, %42, %cst_22 {dimension_numbers = #tpu.dot_dimension_numbers<[1], [0], [0], [1], [0, 0, 1, 1], [], []>} : vector<8x3xbf16>, vector<3x64xbf16>, vector<8x64xf32> -> vector<8x64xf32>
    %44 = arith.addf %38, %43 : vector<8x64xf32>
    %45 = vector.extract_strided_slice %32 {offsets = [2, 0], sizes = [8, 3], strides = [1, 1]} : vector<11x3xf32> to vector<8x3xf32>
    %46 = arith.truncf %45 : vector<8x3xf32> to vector<8x3xbf16>
    %c18 = arith.constant 18 : index
    %c0_23 = arith.constant 0 : index
    %c0_24 = arith.constant 0 : index
    %47 = vector.load %arg6[%c18, %c0_23, %c0_24] : memref<49x3x64xbf16, #tpu.memory_space<vmem>>, vector<1x3x64xbf16>
    %48 = vector.shape_cast %47 : vector<1x3x64xbf16> to vector<3x64xbf16>
    %cst_25 = arith.constant dense<0.000000e+00> : vector<8x64xf32>
    %49 = tpu.matmul %46, %48, %cst_25 {dimension_numbers = #tpu.dot_dimension_numbers<[1], [0], [0], [1], [0, 0, 1, 1], [], []>} : vector<8x3xbf16>, vector<3x64xbf16>, vector<8x64xf32> -> vector<8x64xf32>
    %50 = arith.addf %44, %49 : vector<8x64xf32>
    %51 = vector.extract_strided_slice %32 {offsets = [3, 0], sizes = [8, 3], strides = [1, 1]} : vector<11x3xf32> to vector<8x3xf32>
    %52 = arith.truncf %51 : vector<8x3xf32> to vector<8x3xbf16>
    %c20 = arith.constant 20 : index
    %c0_26 = arith.constant 0 : index
    %c0_27 = arith.constant 0 : index
    %53 = vector.load %arg6[%c20, %c0_26, %c0_27] : memref<49x3x64xbf16, #tpu.memory_space<vmem>>, vector<1x3x64xbf16>
    %54 = vector.shape_cast %53 : vector<1x3x64xbf16> to vector<3x64xbf16>
    %cst_28 = arith.constant dense<0.000000e+00> : vector<8x64xf32>
    %55 = tpu.matmul %52, %54, %cst_28 {dimension_numbers = #tpu.dot_dimension_numbers<[1], [0], [0], [1], [0, 0, 1, 1], [], []>} : vector<8x3xbf16>, vector<3x64xbf16>, vector<8x64xf32> -> vector<8x64xf32>
    %56 = arith.addf %50, %55 : vector<8x64xf32>
    %c2_i32 = arith.constant 2 : i32
    %57 = arith.addi %arg1, %c2_i32 : i32
    %c0_29 = arith.constant 0 : index
    %58 = arith.index_cast %57 : i32 to index
    %c0_30 = arith.constant 0 : index
    %c0_31 = arith.constant 0 : index
    %59 = vector.load %arg2[%c0_29, %58, %c0_30, %c0_31] : memref<1x11x11x3xbf16, #tpu.memory_space<vmem>>, vector<1x1x11x3xbf16>
    %60 = vector.shape_cast %59 : vector<1x1x11x3xbf16> to vector<11x3xbf16>
    %61 = arith.extf %60 : vector<11x3xbf16> to vector<11x3xf32>
    %62 = vector.extract_strided_slice %61 {offsets = [0, 0], sizes = [8, 3], strides = [1, 1]} : vector<11x3xf32> to vector<8x3xf32>
    %63 = arith.truncf %62 : vector<8x3xf32> to vector<8x3xbf16>
    %c28 = arith.constant 28 : index
    %c0_32 = arith.constant 0 : index
    %c0_33 = arith.constant 0 : index
    %64 = vector.load %arg6[%c28, %c0_32, %c0_33] : memref<49x3x64xbf16, #tpu.memory_space<vmem>>, vector<1x3x64xbf16>
    %65 = vector.shape_cast %64 : vector<1x3x64xbf16> to vector<3x64xbf16>
    %cst_34 = arith.constant dense<0.000000e+00> : vector<8x64xf32>
    %66 = tpu.matmul %63, %65, %cst_34 {dimension_numbers = #tpu.dot_dimension_numbers<[1], [0], [0], [1], [0, 0, 1, 1], [], []>} : vector<8x3xbf16>, vector<3x64xbf16>, vector<8x64xf32> -> vector<8x64xf32>
    %67 = arith.addf %56, %66 : vector<8x64xf32>
    %68 = vector.extract_strided_slice %61 {offsets = [1, 0], sizes = [8, 3], strides = [1, 1]} : vector<11x3xf32> to vector<8x3xf32>
    %69 = arith.truncf %68 : vector<8x3xf32> to vector<8x3xbf16>
    %c30 = arith.constant 30 : index
    %c0_35 = arith.constant 0 : index
    %c0_36 = arith.constant 0 : index
    %70 = vector.load %arg6[%c30, %c0_35, %c0_36] : memref<49x3x64xbf16, #tpu.memory_space<vmem>>, vector<1x3x64xbf16>
    %71 = vector.shape_cast %70 : vector<1x3x64xbf16> to vector<3x64xbf16>
    %cst_37 = arith.constant dense<0.000000e+00> : vector<8x64xf32>
    %72 = tpu.matmul %69, %71, %cst_37 {dimension_numbers = #tpu.dot_dimension_numbers<[1], [0], [0], [1], [0, 0, 1, 1], [], []>} : vector<8x3xbf16>, vector<3x64xbf16>, vector<8x64xf32> -> vector<8x64xf32>
    %73 = arith.addf %67, %72 : vector<8x64xf32>
    %74 = vector.extract_strided_slice %61 {offsets = [2, 0], sizes = [8, 3], strides = [1, 1]} : vector<11x3xf32> to vector<8x3xf32>
    %75 = arith.truncf %74 : vector<8x3xf32> to vector<8x3xbf16>
    %c32 = arith.constant 32 : index
    %c0_38 = arith.constant 0 : index
    %c0_39 = arith.constant 0 : index
    %76 = vector.load %arg6[%c32, %c0_38, %c0_39] : memref<49x3x64xbf16, #tpu.memory_space<vmem>>, vector<1x3x64xbf16>
    %77 = vector.shape_cast %76 : vector<1x3x64xbf16> to vector<3x64xbf16>
    %cst_40 = arith.constant dense<0.000000e+00> : vector<8x64xf32>
    %78 = tpu.matmul %75, %77, %cst_40 {dimension_numbers = #tpu.dot_dimension_numbers<[1], [0], [0], [1], [0, 0, 1, 1], [], []>} : vector<8x3xbf16>, vector<3x64xbf16>, vector<8x64xf32> -> vector<8x64xf32>
    %79 = arith.addf %73, %78 : vector<8x64xf32>
    %80 = vector.extract_strided_slice %61 {offsets = [3, 0], sizes = [8, 3], strides = [1, 1]} : vector<11x3xf32> to vector<8x3xf32>
    %81 = arith.truncf %80 : vector<8x3xf32> to vector<8x3xbf16>
    %c34 = arith.constant 34 : index
    %c0_41 = arith.constant 0 : index
    %c0_42 = arith.constant 0 : index
    %82 = vector.load %arg6[%c34, %c0_41, %c0_42] : memref<49x3x64xbf16, #tpu.memory_space<vmem>>, vector<1x3x64xbf16>
    %83 = vector.shape_cast %82 : vector<1x3x64xbf16> to vector<3x64xbf16>
    %cst_43 = arith.constant dense<0.000000e+00> : vector<8x64xf32>
    %84 = tpu.matmul %81, %83, %cst_43 {dimension_numbers = #tpu.dot_dimension_numbers<[1], [0], [0], [1], [0, 0, 1, 1], [], []>} : vector<8x3xbf16>, vector<3x64xbf16>, vector<8x64xf32> -> vector<8x64xf32>
    %85 = arith.addf %79, %84 : vector<8x64xf32>
    %c3_i32 = arith.constant 3 : i32
    %86 = arith.addi %arg1, %c3_i32 : i32
    %c0_44 = arith.constant 0 : index
    %87 = arith.index_cast %86 : i32 to index
    %c0_45 = arith.constant 0 : index
    %c0_46 = arith.constant 0 : index
    %88 = vector.load %arg2[%c0_44, %87, %c0_45, %c0_46] : memref<1x11x11x3xbf16, #tpu.memory_space<vmem>>, vector<1x1x11x3xbf16>
    %89 = vector.shape_cast %88 : vector<1x1x11x3xbf16> to vector<11x3xbf16>
    %90 = arith.extf %89 : vector<11x3xbf16> to vector<11x3xf32>
    %91 = vector.extract_strided_slice %90 {offsets = [0, 0], sizes = [8, 3], strides = [1, 1]} : vector<11x3xf32> to vector<8x3xf32>
    %92 = arith.truncf %91 : vector<8x3xf32> to vector<8x3xbf16>
    %c42 = arith.constant 42 : index
    %c0_47 = arith.constant 0 : index
    %c0_48 = arith.constant 0 : index
    %93 = vector.load %arg6[%c42, %c0_47, %c0_48] : memref<49x3x64xbf16, #tpu.memory_space<vmem>>, vector<1x3x64xbf16>
    %94 = vector.shape_cast %93 : vector<1x3x64xbf16> to vector<3x64xbf16>
    %cst_49 = arith.constant dense<0.000000e+00> : vector<8x64xf32>
    %95 = tpu.matmul %92, %94, %cst_49 {dimension_numbers = #tpu.dot_dimension_numbers<[1], [0], [0], [1], [0, 0, 1, 1], [], []>} : vector<8x3xbf16>, vector<3x64xbf16>, vector<8x64xf32> -> vector<8x64xf32>
    %96 = arith.addf %85, %95 : vector<8x64xf32>
    %97 = vector.extract_strided_slice %90 {offsets = [1, 0], sizes = [8, 3], strides = [1, 1]} : vector<11x3xf32> to vector<8x3xf32>
    %98 = arith.truncf %97 : vector<8x3xf32> to vector<8x3xbf16>
    %c44 = arith.constant 44 : index
    %c0_50 = arith.constant 0 : index
    %c0_51 = arith.constant 0 : index
    %99 = vector.load %arg6[%c44, %c0_50, %c0_51] : memref<49x3x64xbf16, #tpu.memory_space<vmem>>, vector<1x3x64xbf16>
    %100 = vector.shape_cast %99 : vector<1x3x64xbf16> to vector<3x64xbf16>
    %cst_52 = arith.constant dense<0.000000e+00> : vector<8x64xf32>
    %101 = tpu.matmul %98, %100, %cst_52 {dimension_numbers = #tpu.dot_dimension_numbers<[1], [0], [0], [1], [0, 0, 1, 1], [], []>} : vector<8x3xbf16>, vector<3x64xbf16>, vector<8x64xf32> -> vector<8x64xf32>
    %102 = arith.addf %96, %101 : vector<8x64xf32>
    %103 = vector.extract_strided_slice %90 {offsets = [2, 0], sizes = [8, 3], strides = [1, 1]} : vector<11x3xf32> to vector<8x3xf32>
    %104 = arith.truncf %103 : vector<8x3xf32> to vector<8x3xbf16>
    %c46 = arith.constant 46 : index
    %c0_53 = arith.constant 0 : index
    %c0_54 = arith.constant 0 : index
    %105 = vector.load %arg6[%c46, %c0_53, %c0_54] : memref<49x3x64xbf16, #tpu.memory_space<vmem>>, vector<1x3x64xbf16>
    %106 = vector.shape_cast %105 : vector<1x3x64xbf16> to vector<3x64xbf16>
    %cst_55 = arith.constant dense<0.000000e+00> : vector<8x64xf32>
    %107 = tpu.matmul %104, %106, %cst_55 {dimension_numbers = #tpu.dot_dimension_numbers<[1], [0], [0], [1], [0, 0, 1, 1], [], []>} : vector<8x3xbf16>, vector<3x64xbf16>, vector<8x64xf32> -> vector<8x64xf32>
    %108 = arith.addf %102, %107 : vector<8x64xf32>
    %109 = vector.extract_strided_slice %90 {offsets = [3, 0], sizes = [8, 3], strides = [1, 1]} : vector<11x3xf32> to vector<8x3xf32>
    %110 = arith.truncf %109 : vector<8x3xf32> to vector<8x3xbf16>
    %c48 = arith.constant 48 : index
    %c0_56 = arith.constant 0 : index
    %c0_57 = arith.constant 0 : index
    %111 = vector.load %arg6[%c48, %c0_56, %c0_57] : memref<49x3x64xbf16, #tpu.memory_space<vmem>>, vector<1x3x64xbf16>
    %112 = vector.shape_cast %111 : vector<1x3x64xbf16> to vector<3x64xbf16>
    %cst_58 = arith.constant dense<0.000000e+00> : vector<8x64xf32>
    %113 = tpu.matmul %110, %112, %cst_58 {dimension_numbers = #tpu.dot_dimension_numbers<[1], [0], [0], [1], [0, 0, 1, 1], [], []>} : vector<8x3xbf16>, vector<3x64xbf16>, vector<8x64xf32> -> vector<8x64xf32>
    %114 = arith.addf %108, %113 : vector<8x64xf32>
    %c0_i32_59 = arith.constant 0 : i32
    %115 = arith.addi %arg1, %c0_i32_59 : i32
    %c0_60 = arith.constant 0 : index
    %116 = arith.index_cast %115 : i32 to index
    %c0_61 = arith.constant 0 : index
    %c0_62 = arith.constant 0 : index
    %117 = vector.load %arg3[%c0_60, %116, %c0_61, %c0_62] : memref<1x11x11x3xbf16, #tpu.memory_space<vmem>>, vector<1x1x11x3xbf16>
    %118 = vector.shape_cast %117 : vector<1x1x11x3xbf16> to vector<11x3xbf16>
    %119 = arith.extf %118 : vector<11x3xbf16> to vector<11x3xf32>
    %120 = vector.extract_strided_slice %119 {offsets = [0, 0], sizes = [8, 3], strides = [1, 1]} : vector<11x3xf32> to vector<8x3xf32>
    %121 = arith.truncf %120 : vector<8x3xf32> to vector<8x3xbf16>
    %c1 = arith.constant 1 : index
    %c0_63 = arith.constant 0 : index
    %c0_64 = arith.constant 0 : index
    %122 = vector.load %arg6[%c1, %c0_63, %c0_64] : memref<49x3x64xbf16, #tpu.memory_space<vmem>>, vector<1x3x64xbf16>
    %123 = vector.shape_cast %122 : vector<1x3x64xbf16> to vector<3x64xbf16>
    %cst_65 = arith.constant dense<0.000000e+00> : vector<8x64xf32>
    %124 = tpu.matmul %121, %123, %cst_65 {dimension_numbers = #tpu.dot_dimension_numbers<[1], [0], [0], [1], [0, 0, 1, 1], [], []>} : vector<8x3xbf16>, vector<3x64xbf16>, vector<8x64xf32> -> vector<8x64xf32>
    %125 = arith.addf %114, %124 : vector<8x64xf32>
    %126 = vector.extract_strided_slice %119 {offsets = [1, 0], sizes = [8, 3], strides = [1, 1]} : vector<11x3xf32> to vector<8x3xf32>
    %127 = arith.truncf %126 : vector<8x3xf32> to vector<8x3xbf16>
    %c3 = arith.constant 3 : index
    %c0_66 = arith.constant 0 : index
    %c0_67 = arith.constant 0 : index
    %128 = vector.load %arg6[%c3, %c0_66, %c0_67] : memref<49x3x64xbf16, #tpu.memory_space<vmem>>, vector<1x3x64xbf16>
    %129 = vector.shape_cast %128 : vector<1x3x64xbf16> to vector<3x64xbf16>
    %cst_68 = arith.constant dense<0.000000e+00> : vector<8x64xf32>
    %130 = tpu.matmul %127, %129, %cst_68 {dimension_numbers = #tpu.dot_dimension_numbers<[1], [0], [0], [1], [0, 0, 1, 1], [], []>} : vector<8x3xbf16>, vector<3x64xbf16>, vector<8x64xf32> -> vector<8x64xf32>
    %131 = arith.addf %125, %130 : vector<8x64xf32>
    %132 = vector.extract_strided_slice %119 {offsets = [2, 0], sizes = [8, 3], strides = [1, 1]} : vector<11x3xf32> to vector<8x3xf32>
    %133 = arith.truncf %132 : vector<8x3xf32> to vector<8x3xbf16>
    %c5 = arith.constant 5 : index
    %c0_69 = arith.constant 0 : index
    %c0_70 = arith.constant 0 : index
    %134 = vector.load %arg6[%c5, %c0_69, %c0_70] : memref<49x3x64xbf16, #tpu.memory_space<vmem>>, vector<1x3x64xbf16>
    %135 = vector.shape_cast %134 : vector<1x3x64xbf16> to vector<3x64xbf16>
    %cst_71 = arith.constant dense<0.000000e+00> : vector<8x64xf32>
    %136 = tpu.matmul %133, %135, %cst_71 {dimension_numbers = #tpu.dot_dimension_numbers<[1], [0], [0], [1], [0, 0, 1, 1], [], []>} : vector<8x3xbf16>, vector<3x64xbf16>, vector<8x64xf32> -> vector<8x64xf32>
    %137 = arith.addf %131, %136 : vector<8x64xf32>
    %c1_i32_72 = arith.constant 1 : i32
    %138 = arith.addi %arg1, %c1_i32_72 : i32
    %c0_73 = arith.constant 0 : index
    %139 = arith.index_cast %138 : i32 to index
    %c0_74 = arith.constant 0 : index
    %c0_75 = arith.constant 0 : index
    %140 = vector.load %arg3[%c0_73, %139, %c0_74, %c0_75] : memref<1x11x11x3xbf16, #tpu.memory_space<vmem>>, vector<1x1x11x3xbf16>
    %141 = vector.shape_cast %140 : vector<1x1x11x3xbf16> to vector<11x3xbf16>
    %142 = arith.extf %141 : vector<11x3xbf16> to vector<11x3xf32>
    %143 = vector.extract_strided_slice %142 {offsets = [0, 0], sizes = [8, 3], strides = [1, 1]} : vector<11x3xf32> to vector<8x3xf32>
    %144 = arith.truncf %143 : vector<8x3xf32> to vector<8x3xbf16>
    %c15 = arith.constant 15 : index
    %c0_76 = arith.constant 0 : index
    %c0_77 = arith.constant 0 : index
    %145 = vector.load %arg6[%c15, %c0_76, %c0_77] : memref<49x3x64xbf16, #tpu.memory_space<vmem>>, vector<1x3x64xbf16>
    %146 = vector.shape_cast %145 : vector<1x3x64xbf16> to vector<3x64xbf16>
    %cst_78 = arith.constant dense<0.000000e+00> : vector<8x64xf32>
    %147 = tpu.matmul %144, %146, %cst_78 {dimension_numbers = #tpu.dot_dimension_numbers<[1], [0], [0], [1], [0, 0, 1, 1], [], []>} : vector<8x3xbf16>, vector<3x64xbf16>, vector<8x64xf32> -> vector<8x64xf32>
    %148 = arith.addf %137, %147 : vector<8x64xf32>
    %149 = vector.extract_strided_slice %142 {offsets = [1, 0], sizes = [8, 3], strides = [1, 1]} : vector<11x3xf32> to vector<8x3xf32>
    %150 = arith.truncf %149 : vector<8x3xf32> to vector<8x3xbf16>
    %c17 = arith.constant 17 : index
    %c0_79 = arith.constant 0 : index
    %c0_80 = arith.constant 0 : index
    %151 = vector.load %arg6[%c17, %c0_79, %c0_80] : memref<49x3x64xbf16, #tpu.memory_space<vmem>>, vector<1x3x64xbf16>
    %152 = vector.shape_cast %151 : vector<1x3x64xbf16> to vector<3x64xbf16>
    %cst_81 = arith.constant dense<0.000000e+00> : vector<8x64xf32>
    %153 = tpu.matmul %150, %152, %cst_81 {dimension_numbers = #tpu.dot_dimension_numbers<[1], [0], [0], [1], [0, 0, 1, 1], [], []>} : vector<8x3xbf16>, vector<3x64xbf16>, vector<8x64xf32> -> vector<8x64xf32>
    %154 = arith.addf %148, %153 : vector<8x64xf32>
    %155 = vector.extract_strided_slice %142 {offsets = [2, 0], sizes = [8, 3], strides = [1, 1]} : vector<11x3xf32> to vector<8x3xf32>
    %156 = arith.truncf %155 : vector<8x3xf32> to vector<8x3xbf16>
    %c19 = arith.constant 19 : index
    %c0_82 = arith.constant 0 : index
    %c0_83 = arith.constant 0 : index
    %157 = vector.load %arg6[%c19, %c0_82, %c0_83] : memref<49x3x64xbf16, #tpu.memory_space<vmem>>, vector<1x3x64xbf16>
    %158 = vector.shape_cast %157 : vector<1x3x64xbf16> to vector<3x64xbf16>
    %cst_84 = arith.constant dense<0.000000e+00> : vector<8x64xf32>
    %159 = tpu.matmul %156, %158, %cst_84 {dimension_numbers = #tpu.dot_dimension_numbers<[1], [0], [0], [1], [0, 0, 1, 1], [], []>} : vector<8x3xbf16>, vector<3x64xbf16>, vector<8x64xf32> -> vector<8x64xf32>
    %160 = arith.addf %154, %159 : vector<8x64xf32>
    %c2_i32_85 = arith.constant 2 : i32
    %161 = arith.addi %arg1, %c2_i32_85 : i32
    %c0_86 = arith.constant 0 : index
    %162 = arith.index_cast %161 : i32 to index
    %c0_87 = arith.constant 0 : index
    %c0_88 = arith.constant 0 : index
    %163 = vector.load %arg3[%c0_86, %162, %c0_87, %c0_88] : memref<1x11x11x3xbf16, #tpu.memory_space<vmem>>, vector<1x1x11x3xbf16>
    %164 = vector.shape_cast %163 : vector<1x1x11x3xbf16> to vector<11x3xbf16>
    %165 = arith.extf %164 : vector<11x3xbf16> to vector<11x3xf32>
    %166 = vector.extract_strided_slice %165 {offsets = [0, 0], sizes = [8, 3], strides = [1, 1]} : vector<11x3xf32> to vector<8x3xf32>
    %167 = arith.truncf %166 : vector<8x3xf32> to vector<8x3xbf16>
    %c29 = arith.constant 29 : index
    %c0_89 = arith.constant 0 : index
    %c0_90 = arith.constant 0 : index
    %168 = vector.load %arg6[%c29, %c0_89, %c0_90] : memref<49x3x64xbf16, #tpu.memory_space<vmem>>, vector<1x3x64xbf16>
    %169 = vector.shape_cast %168 : vector<1x3x64xbf16> to vector<3x64xbf16>
    %cst_91 = arith.constant dense<0.000000e+00> : vector<8x64xf32>
    %170 = tpu.matmul %167, %169, %cst_91 {dimension_numbers = #tpu.dot_dimension_numbers<[1], [0], [0], [1], [0, 0, 1, 1], [], []>} : vector<8x3xbf16>, vector<3x64xbf16>, vector<8x64xf32> -> vector<8x64xf32>
    %171 = arith.addf %160, %170 : vector<8x64xf32>
    %172 = vector.extract_strided_slice %165 {offsets = [1, 0], sizes = [8, 3], strides = [1, 1]} : vector<11x3xf32> to vector<8x3xf32>
    %173 = arith.truncf %172 : vector<8x3xf32> to vector<8x3xbf16>
    %c31 = arith.constant 31 : index
    %c0_92 = arith.constant 0 : index
    %c0_93 = arith.constant 0 : index
    %174 = vector.load %arg6[%c31, %c0_92, %c0_93] : memref<49x3x64xbf16, #tpu.memory_space<vmem>>, vector<1x3x64xbf16>
    %175 = vector.shape_cast %174 : vector<1x3x64xbf16> to vector<3x64xbf16>
    %cst_94 = arith.constant dense<0.000000e+00> : vector<8x64xf32>
    %176 = tpu.matmul %173, %175, %cst_94 {dimension_numbers = #tpu.dot_dimension_numbers<[1], [0], [0], [1], [0, 0, 1, 1], [], []>} : vector<8x3xbf16>, vector<3x64xbf16>, vector<8x64xf32> -> vector<8x64xf32>
    %177 = arith.addf %171, %176 : vector<8x64xf32>
    %178 = vector.extract_strided_slice %165 {offsets = [2, 0], sizes = [8, 3], strides = [1, 1]} : vector<11x3xf32> to vector<8x3xf32>
    %179 = arith.truncf %178 : vector<8x3xf32> to vector<8x3xbf16>
    %c33 = arith.constant 33 : index
    %c0_95 = arith.constant 0 : index
    %c0_96 = arith.constant 0 : index
    %180 = vector.load %arg6[%c33, %c0_95, %c0_96] : memref<49x3x64xbf16, #tpu.memory_space<vmem>>, vector<1x3x64xbf16>
    %181 = vector.shape_cast %180 : vector<1x3x64xbf16> to vector<3x64xbf16>
    %cst_97 = arith.constant dense<0.000000e+00> : vector<8x64xf32>
    %182 = tpu.matmul %179, %181, %cst_97 {dimension_numbers = #tpu.dot_dimension_numbers<[1], [0], [0], [1], [0, 0, 1, 1], [], []>} : vector<8x3xbf16>, vector<3x64xbf16>, vector<8x64xf32> -> vector<8x64xf32>
    %183 = arith.addf %177, %182 : vector<8x64xf32>
    %c3_i32_98 = arith.constant 3 : i32
    %184 = arith.addi %arg1, %c3_i32_98 : i32
    %c0_99 = arith.constant 0 : index
    %185 = arith.index_cast %184 : i32 to index
    %c0_100 = arith.constant 0 : index
    %c0_101 = arith.constant 0 : index
    %186 = vector.load %arg3[%c0_99, %185, %c0_100, %c0_101] : memref<1x11x11x3xbf16, #tpu.memory_space<vmem>>, vector<1x1x11x3xbf16>
    %187 = vector.shape_cast %186 : vector<1x1x11x3xbf16> to vector<11x3xbf16>
    %188 = arith.extf %187 : vector<11x3xbf16> to vector<11x3xf32>
    %189 = vector.extract_strided_slice %188 {offsets = [0, 0], sizes = [8, 3], strides = [1, 1]} : vector<11x3xf32> to vector<8x3xf32>
    %190 = arith.truncf %189 : vector<8x3xf32> to vector<8x3xbf16>
    %c43 = arith.constant 43 : index
    %c0_102 = arith.constant 0 : index
    %c0_103 = arith.constant 0 : index
    %191 = vector.load %arg6[%c43, %c0_102, %c0_103] : memref<49x3x64xbf16, #tpu.memory_space<vmem>>, vector<1x3x64xbf16>
    %192 = vector.shape_cast %191 : vector<1x3x64xbf16> to vector<3x64xbf16>
    %cst_104 = arith.constant dense<0.000000e+00> : vector<8x64xf32>
    %193 = tpu.matmul %190, %192, %cst_104 {dimension_numbers = #tpu.dot_dimension_numbers<[1], [0], [0], [1], [0, 0, 1, 1], [], []>} : vector<8x3xbf16>, vector<3x64xbf16>, vector<8x64xf32> -> vector<8x64xf32>
    %194 = arith.addf %183, %193 : vector<8x64xf32>
    %195 = vector.extract_strided_slice %188 {offsets = [1, 0], sizes = [8, 3], strides = [1, 1]} : vector<11x3xf32> to vector<8x3xf32>
    %196 = arith.truncf %195 : vector<8x3xf32> to vector<8x3xbf16>
    %c45 = arith.constant 45 : index
    %c0_105 = arith.constant 0 : index
    %c0_106 = arith.constant 0 : index
    %197 = vector.load %arg6[%c45, %c0_105, %c0_106] : memref<49x3x64xbf16, #tpu.memory_space<vmem>>, vector<1x3x64xbf16>
    %198 = vector.shape_cast %197 : vector<1x3x64xbf16> to vector<3x64xbf16>
    %cst_107 = arith.constant dense<0.000000e+00> : vector<8x64xf32>
    %199 = tpu.matmul %196, %198, %cst_107 {dimension_numbers = #tpu.dot_dimension_numbers<[1], [0], [0], [1], [0, 0, 1, 1], [], []>} : vector<8x3xbf16>, vector<3x64xbf16>, vector<8x64xf32> -> vector<8x64xf32>
    %200 = arith.addf %194, %199 : vector<8x64xf32>
    %201 = vector.extract_strided_slice %188 {offsets = [2, 0], sizes = [8, 3], strides = [1, 1]} : vector<11x3xf32> to vector<8x3xf32>
    %202 = arith.truncf %201 : vector<8x3xf32> to vector<8x3xbf16>
    %c47 = arith.constant 47 : index
    %c0_108 = arith.constant 0 : index
    %c0_109 = arith.constant 0 : index
    %203 = vector.load %arg6[%c47, %c0_108, %c0_109] : memref<49x3x64xbf16, #tpu.memory_space<vmem>>, vector<1x3x64xbf16>
    %204 = vector.shape_cast %203 : vector<1x3x64xbf16> to vector<3x64xbf16>
    %cst_110 = arith.constant dense<0.000000e+00> : vector<8x64xf32>
    %205 = tpu.matmul %202, %204, %cst_110 {dimension_numbers = #tpu.dot_dimension_numbers<[1], [0], [0], [1], [0, 0, 1, 1], [], []>} : vector<8x3xbf16>, vector<3x64xbf16>, vector<8x64xf32> -> vector<8x64xf32>
    %206 = arith.addf %200, %205 : vector<8x64xf32>
    %c0_i32_111 = arith.constant 0 : i32
    %207 = arith.addi %arg1, %c0_i32_111 : i32
    %c0_112 = arith.constant 0 : index
    %208 = arith.index_cast %207 : i32 to index
    %c0_113 = arith.constant 0 : index
    %c0_114 = arith.constant 0 : index
    %209 = vector.load %arg4[%c0_112, %208, %c0_113, %c0_114] : memref<1x11x11x3xbf16, #tpu.memory_space<vmem>>, vector<1x1x11x3xbf16>
    %210 = vector.shape_cast %209 : vector<1x1x11x3xbf16> to vector<11x3xbf16>
    %211 = arith.extf %210 : vector<11x3xbf16> to vector<11x3xf32>
    %212 = vector.extract_strided_slice %211 {offsets = [0, 0], sizes = [8, 3], strides = [1, 1]} : vector<11x3xf32> to vector<8x3xf32>
    %213 = arith.truncf %212 : vector<8x3xf32> to vector<8x3xbf16>
    %c7 = arith.constant 7 : index
    %c0_115 = arith.constant 0 : index
    %c0_116 = arith.constant 0 : index
    %214 = vector.load %arg6[%c7, %c0_115, %c0_116] : memref<49x3x64xbf16, #tpu.memory_space<vmem>>, vector<1x3x64xbf16>
    %215 = vector.shape_cast %214 : vector<1x3x64xbf16> to vector<3x64xbf16>
    %cst_117 = arith.constant dense<0.000000e+00> : vector<8x64xf32>
    %216 = tpu.matmul %213, %215, %cst_117 {dimension_numbers = #tpu.dot_dimension_numbers<[1], [0], [0], [1], [0, 0, 1, 1], [], []>} : vector<8x3xbf16>, vector<3x64xbf16>, vector<8x64xf32> -> vector<8x64xf32>
    %217 = arith.addf %206, %216 : vector<8x64xf32>
    %218 = vector.extract_strided_slice %211 {offsets = [1, 0], sizes = [8, 3], strides = [1, 1]} : vector<11x3xf32> to vector<8x3xf32>
    %219 = arith.truncf %218 : vector<8x3xf32> to vector<8x3xbf16>
    %c9 = arith.constant 9 : index
    %c0_118 = arith.constant 0 : index
    %c0_119 = arith.constant 0 : index
    %220 = vector.load %arg6[%c9, %c0_118, %c0_119] : memref<49x3x64xbf16, #tpu.memory_space<vmem>>, vector<1x3x64xbf16>
    %221 = vector.shape_cast %220 : vector<1x3x64xbf16> to vector<3x64xbf16>
    %cst_120 = arith.constant dense<0.000000e+00> : vector<8x64xf32>
    %222 = tpu.matmul %219, %221, %cst_120 {dimension_numbers = #tpu.dot_dimension_numbers<[1], [0], [0], [1], [0, 0, 1, 1], [], []>} : vector<8x3xbf16>, vector<3x64xbf16>, vector<8x64xf32> -> vector<8x64xf32>
    %223 = arith.addf %217, %222 : vector<8x64xf32>
    %224 = vector.extract_strided_slice %211 {offsets = [2, 0], sizes = [8, 3], strides = [1, 1]} : vector<11x3xf32> to vector<8x3xf32>
    %225 = arith.truncf %224 : vector<8x3xf32> to vector<8x3xbf16>
    %c11 = arith.constant 11 : index
    %c0_121 = arith.constant 0 : index
    %c0_122 = arith.constant 0 : index
    %226 = vector.load %arg6[%c11, %c0_121, %c0_122] : memref<49x3x64xbf16, #tpu.memory_space<vmem>>, vector<1x3x64xbf16>
    %227 = vector.shape_cast %226 : vector<1x3x64xbf16> to vector<3x64xbf16>
    %cst_123 = arith.constant dense<0.000000e+00> : vector<8x64xf32>
    %228 = tpu.matmul %225, %227, %cst_123 {dimension_numbers = #tpu.dot_dimension_numbers<[1], [0], [0], [1], [0, 0, 1, 1], [], []>} : vector<8x3xbf16>, vector<3x64xbf16>, vector<8x64xf32> -> vector<8x64xf32>
    %229 = arith.addf %223, %228 : vector<8x64xf32>
    %230 = vector.extract_strided_slice %211 {offsets = [3, 0], sizes = [8, 3], strides = [1, 1]} : vector<11x3xf32> to vector<8x3xf32>
    %231 = arith.truncf %230 : vector<8x3xf32> to vector<8x3xbf16>
    %c13 = arith.constant 13 : index
    %c0_124 = arith.constant 0 : index
    %c0_125 = arith.constant 0 : index
    %232 = vector.load %arg6[%c13, %c0_124, %c0_125] : memref<49x3x64xbf16, #tpu.memory_space<vmem>>, vector<1x3x64xbf16>
    %233 = vector.shape_cast %232 : vector<1x3x64xbf16> to vector<3x64xbf16>
    %cst_126 = arith.constant dense<0.000000e+00> : vector<8x64xf32>
    %234 = tpu.matmul %231, %233, %cst_126 {dimension_numbers = #tpu.dot_dimension_numbers<[1], [0], [0], [1], [0, 0, 1, 1], [], []>} : vector<8x3xbf16>, vector<3x64xbf16>, vector<8x64xf32> -> vector<8x64xf32>
    %235 = arith.addf %229, %234 : vector<8x64xf32>
    %c1_i32_127 = arith.constant 1 : i32
    %236 = arith.addi %arg1, %c1_i32_127 : i32
    %c0_128 = arith.constant 0 : index
    %237 = arith.index_cast %236 : i32 to index
    %c0_129 = arith.constant 0 : index
    %c0_130 = arith.constant 0 : index
    %238 = vector.load %arg4[%c0_128, %237, %c0_129, %c0_130] : memref<1x11x11x3xbf16, #tpu.memory_space<vmem>>, vector<1x1x11x3xbf16>
    %239 = vector.shape_cast %238 : vector<1x1x11x3xbf16> to vector<11x3xbf16>
    %240 = arith.extf %239 : vector<11x3xbf16> to vector<11x3xf32>
    %241 = vector.extract_strided_slice %240 {offsets = [0, 0], sizes = [8, 3], strides = [1, 1]} : vector<11x3xf32> to vector<8x3xf32>
    %242 = arith.truncf %241 : vector<8x3xf32> to vector<8x3xbf16>
    %c21 = arith.constant 21 : index
    %c0_131 = arith.constant 0 : index
    %c0_132 = arith.constant 0 : index
    %243 = vector.load %arg6[%c21, %c0_131, %c0_132] : memref<49x3x64xbf16, #tpu.memory_space<vmem>>, vector<1x3x64xbf16>
    %244 = vector.shape_cast %243 : vector<1x3x64xbf16> to vector<3x64xbf16>
    %cst_133 = arith.constant dense<0.000000e+00> : vector<8x64xf32>
    %245 = tpu.matmul %242, %244, %cst_133 {dimension_numbers = #tpu.dot_dimension_numbers<[1], [0], [0], [1], [0, 0, 1, 1], [], []>} : vector<8x3xbf16>, vector<3x64xbf16>, vector<8x64xf32> -> vector<8x64xf32>
    %246 = arith.addf %235, %245 : vector<8x64xf32>
    %247 = vector.extract_strided_slice %240 {offsets = [1, 0], sizes = [8, 3], strides = [1, 1]} : vector<11x3xf32> to vector<8x3xf32>
    %248 = arith.truncf %247 : vector<8x3xf32> to vector<8x3xbf16>
    %c23 = arith.constant 23 : index
    %c0_134 = arith.constant 0 : index
    %c0_135 = arith.constant 0 : index
    %249 = vector.load %arg6[%c23, %c0_134, %c0_135] : memref<49x3x64xbf16, #tpu.memory_space<vmem>>, vector<1x3x64xbf16>
    %250 = vector.shape_cast %249 : vector<1x3x64xbf16> to vector<3x64xbf16>
    %cst_136 = arith.constant dense<0.000000e+00> : vector<8x64xf32>
    %251 = tpu.matmul %248, %250, %cst_136 {dimension_numbers = #tpu.dot_dimension_numbers<[1], [0], [0], [1], [0, 0, 1, 1], [], []>} : vector<8x3xbf16>, vector<3x64xbf16>, vector<8x64xf32> -> vector<8x64xf32>
    %252 = arith.addf %246, %251 : vector<8x64xf32>
    %253 = vector.extract_strided_slice %240 {offsets = [2, 0], sizes = [8, 3], strides = [1, 1]} : vector<11x3xf32> to vector<8x3xf32>
    %254 = arith.truncf %253 : vector<8x3xf32> to vector<8x3xbf16>
    %c25 = arith.constant 25 : index
    %c0_137 = arith.constant 0 : index
    %c0_138 = arith.constant 0 : index
    %255 = vector.load %arg6[%c25, %c0_137, %c0_138] : memref<49x3x64xbf16, #tpu.memory_space<vmem>>, vector<1x3x64xbf16>
    %256 = vector.shape_cast %255 : vector<1x3x64xbf16> to vector<3x64xbf16>
    %cst_139 = arith.constant dense<0.000000e+00> : vector<8x64xf32>
    %257 = tpu.matmul %254, %256, %cst_139 {dimension_numbers = #tpu.dot_dimension_numbers<[1], [0], [0], [1], [0, 0, 1, 1], [], []>} : vector<8x3xbf16>, vector<3x64xbf16>, vector<8x64xf32> -> vector<8x64xf32>
    %258 = arith.addf %252, %257 : vector<8x64xf32>
    %259 = vector.extract_strided_slice %240 {offsets = [3, 0], sizes = [8, 3], strides = [1, 1]} : vector<11x3xf32> to vector<8x3xf32>
    %260 = arith.truncf %259 : vector<8x3xf32> to vector<8x3xbf16>
    %c27 = arith.constant 27 : index
    %c0_140 = arith.constant 0 : index
    %c0_141 = arith.constant 0 : index
    %261 = vector.load %arg6[%c27, %c0_140, %c0_141] : memref<49x3x64xbf16, #tpu.memory_space<vmem>>, vector<1x3x64xbf16>
    %262 = vector.shape_cast %261 : vector<1x3x64xbf16> to vector<3x64xbf16>
    %cst_142 = arith.constant dense<0.000000e+00> : vector<8x64xf32>
    %263 = tpu.matmul %260, %262, %cst_142 {dimension_numbers = #tpu.dot_dimension_numbers<[1], [0], [0], [1], [0, 0, 1, 1], [], []>} : vector<8x3xbf16>, vector<3x64xbf16>, vector<8x64xf32> -> vector<8x64xf32>
    %264 = arith.addf %258, %263 : vector<8x64xf32>
    %c2_i32_143 = arith.constant 2 : i32
    %265 = arith.addi %arg1, %c2_i32_143 : i32
    %c0_144 = arith.constant 0 : index
    %266 = arith.index_cast %265 : i32 to index
    %c0_145 = arith.constant 0 : index
    %c0_146 = arith.constant 0 : index
    %267 = vector.load %arg4[%c0_144, %266, %c0_145, %c0_146] : memref<1x11x11x3xbf16, #tpu.memory_space<vmem>>, vector<1x1x11x3xbf16>
    %268 = vector.shape_cast %267 : vector<1x1x11x3xbf16> to vector<11x3xbf16>
    %269 = arith.extf %268 : vector<11x3xbf16> to vector<11x3xf32>
    %270 = vector.extract_strided_slice %269 {offsets = [0, 0], sizes = [8, 3], strides = [1, 1]} : vector<11x3xf32> to vector<8x3xf32>
    %271 = arith.truncf %270 : vector<8x3xf32> to vector<8x3xbf16>
    %c35 = arith.constant 35 : index
    %c0_147 = arith.constant 0 : index
    %c0_148 = arith.constant 0 : index
    %272 = vector.load %arg6[%c35, %c0_147, %c0_148] : memref<49x3x64xbf16, #tpu.memory_space<vmem>>, vector<1x3x64xbf16>
    %273 = vector.shape_cast %272 : vector<1x3x64xbf16> to vector<3x64xbf16>
    %cst_149 = arith.constant dense<0.000000e+00> : vector<8x64xf32>
    %274 = tpu.matmul %271, %273, %cst_149 {dimension_numbers = #tpu.dot_dimension_numbers<[1], [0], [0], [1], [0, 0, 1, 1], [], []>} : vector<8x3xbf16>, vector<3x64xbf16>, vector<8x64xf32> -> vector<8x64xf32>
    %275 = arith.addf %264, %274 : vector<8x64xf32>
    %276 = vector.extract_strided_slice %269 {offsets = [1, 0], sizes = [8, 3], strides = [1, 1]} : vector<11x3xf32> to vector<8x3xf32>
    %277 = arith.truncf %276 : vector<8x3xf32> to vector<8x3xbf16>
    %c37 = arith.constant 37 : index
    %c0_150 = arith.constant 0 : index
    %c0_151 = arith.constant 0 : index
    %278 = vector.load %arg6[%c37, %c0_150, %c0_151] : memref<49x3x64xbf16, #tpu.memory_space<vmem>>, vector<1x3x64xbf16>
    %279 = vector.shape_cast %278 : vector<1x3x64xbf16> to vector<3x64xbf16>
    %cst_152 = arith.constant dense<0.000000e+00> : vector<8x64xf32>
    %280 = tpu.matmul %277, %279, %cst_152 {dimension_numbers = #tpu.dot_dimension_numbers<[1], [0], [0], [1], [0, 0, 1, 1], [], []>} : vector<8x3xbf16>, vector<3x64xbf16>, vector<8x64xf32> -> vector<8x64xf32>
    %281 = arith.addf %275, %280 : vector<8x64xf32>
    %282 = vector.extract_strided_slice %269 {offsets = [2, 0], sizes = [8, 3], strides = [1, 1]} : vector<11x3xf32> to vector<8x3xf32>
    %283 = arith.truncf %282 : vector<8x3xf32> to vector<8x3xbf16>
    %c39 = arith.constant 39 : index
    %c0_153 = arith.constant 0 : index
    %c0_154 = arith.constant 0 : index
    %284 = vector.load %arg6[%c39, %c0_153, %c0_154] : memref<49x3x64xbf16, #tpu.memory_space<vmem>>, vector<1x3x64xbf16>
    %285 = vector.shape_cast %284 : vector<1x3x64xbf16> to vector<3x64xbf16>
    %cst_155 = arith.constant dense<0.000000e+00> : vector<8x64xf32>
    %286 = tpu.matmul %283, %285, %cst_155 {dimension_numbers = #tpu.dot_dimension_numbers<[1], [0], [0], [1], [0, 0, 1, 1], [], []>} : vector<8x3xbf16>, vector<3x64xbf16>, vector<8x64xf32> -> vector<8x64xf32>
    %287 = arith.addf %281, %286 : vector<8x64xf32>
    %288 = vector.extract_strided_slice %269 {offsets = [3, 0], sizes = [8, 3], strides = [1, 1]} : vector<11x3xf32> to vector<8x3xf32>
    %289 = arith.truncf %288 : vector<8x3xf32> to vector<8x3xbf16>
    %c41 = arith.constant 41 : index
    %c0_156 = arith.constant 0 : index
    %c0_157 = arith.constant 0 : index
    %290 = vector.load %arg6[%c41, %c0_156, %c0_157] : memref<49x3x64xbf16, #tpu.memory_space<vmem>>, vector<1x3x64xbf16>
    %291 = vector.shape_cast %290 : vector<1x3x64xbf16> to vector<3x64xbf16>
    %cst_158 = arith.constant dense<0.000000e+00> : vector<8x64xf32>
    %292 = tpu.matmul %289, %291, %cst_158 {dimension_numbers = #tpu.dot_dimension_numbers<[1], [0], [0], [1], [0, 0, 1, 1], [], []>} : vector<8x3xbf16>, vector<3x64xbf16>, vector<8x64xf32> -> vector<8x64xf32>
    %293 = arith.addf %287, %292 : vector<8x64xf32>
    %c0_i32_159 = arith.constant 0 : i32
    %294 = arith.addi %arg1, %c0_i32_159 : i32
    %c0_160 = arith.constant 0 : index
    %295 = arith.index_cast %294 : i32 to index
    %c0_161 = arith.constant 0 : index
    %c0_162 = arith.constant 0 : index
    %296 = vector.load %arg5[%c0_160, %295, %c0_161, %c0_162] : memref<1x11x11x3xbf16, #tpu.memory_space<vmem>>, vector<1x1x11x3xbf16>
    %297 = vector.shape_cast %296 : vector<1x1x11x3xbf16> to vector<11x3xbf16>
    %298 = arith.extf %297 : vector<11x3xbf16> to vector<11x3xf32>
    %299 = vector.extract_strided_slice %298 {offsets = [0, 0], sizes = [8, 3], strides = [1, 1]} : vector<11x3xf32> to vector<8x3xf32>
    %300 = arith.truncf %299 : vector<8x3xf32> to vector<8x3xbf16>
    %c8 = arith.constant 8 : index
    %c0_163 = arith.constant 0 : index
    %c0_164 = arith.constant 0 : index
    %301 = vector.load %arg6[%c8, %c0_163, %c0_164] : memref<49x3x64xbf16, #tpu.memory_space<vmem>>, vector<1x3x64xbf16>
    %302 = vector.shape_cast %301 : vector<1x3x64xbf16> to vector<3x64xbf16>
    %cst_165 = arith.constant dense<0.000000e+00> : vector<8x64xf32>
    %303 = tpu.matmul %300, %302, %cst_165 {dimension_numbers = #tpu.dot_dimension_numbers<[1], [0], [0], [1], [0, 0, 1, 1], [], []>} : vector<8x3xbf16>, vector<3x64xbf16>, vector<8x64xf32> -> vector<8x64xf32>
    %304 = arith.addf %293, %303 : vector<8x64xf32>
    %305 = vector.extract_strided_slice %298 {offsets = [1, 0], sizes = [8, 3], strides = [1, 1]} : vector<11x3xf32> to vector<8x3xf32>
    %306 = arith.truncf %305 : vector<8x3xf32> to vector<8x3xbf16>
    %c10 = arith.constant 10 : index
    %c0_166 = arith.constant 0 : index
    %c0_167 = arith.constant 0 : index
    %307 = vector.load %arg6[%c10, %c0_166, %c0_167] : memref<49x3x64xbf16, #tpu.memory_space<vmem>>, vector<1x3x64xbf16>
    %308 = vector.shape_cast %307 : vector<1x3x64xbf16> to vector<3x64xbf16>
    %cst_168 = arith.constant dense<0.000000e+00> : vector<8x64xf32>
    %309 = tpu.matmul %306, %308, %cst_168 {dimension_numbers = #tpu.dot_dimension_numbers<[1], [0], [0], [1], [0, 0, 1, 1], [], []>} : vector<8x3xbf16>, vector<3x64xbf16>, vector<8x64xf32> -> vector<8x64xf32>
    %310 = arith.addf %304, %309 : vector<8x64xf32>
    %311 = vector.extract_strided_slice %298 {offsets = [2, 0], sizes = [8, 3], strides = [1, 1]} : vector<11x3xf32> to vector<8x3xf32>
    %312 = arith.truncf %311 : vector<8x3xf32> to vector<8x3xbf16>
    %c12 = arith.constant 12 : index
    %c0_169 = arith.constant 0 : index
    %c0_170 = arith.constant 0 : index
    %313 = vector.load %arg6[%c12, %c0_169, %c0_170] : memref<49x3x64xbf16, #tpu.memory_space<vmem>>, vector<1x3x64xbf16>
    %314 = vector.shape_cast %313 : vector<1x3x64xbf16> to vector<3x64xbf16>
    %cst_171 = arith.constant dense<0.000000e+00> : vector<8x64xf32>
    %315 = tpu.matmul %312, %314, %cst_171 {dimension_numbers = #tpu.dot_dimension_numbers<[1], [0], [0], [1], [0, 0, 1, 1], [], []>} : vector<8x3xbf16>, vector<3x64xbf16>, vector<8x64xf32> -> vector<8x64xf32>
    %316 = arith.addf %310, %315 : vector<8x64xf32>
    %c1_i32_172 = arith.constant 1 : i32
    %317 = arith.addi %arg1, %c1_i32_172 : i32
    %c0_173 = arith.constant 0 : index
    %318 = arith.index_cast %317 : i32 to index
    %c0_174 = arith.constant 0 : index
    %c0_175 = arith.constant 0 : index
    %319 = vector.load %arg5[%c0_173, %318, %c0_174, %c0_175] : memref<1x11x11x3xbf16, #tpu.memory_space<vmem>>, vector<1x1x11x3xbf16>
    %320 = vector.shape_cast %319 : vector<1x1x11x3xbf16> to vector<11x3xbf16>
    %321 = arith.extf %320 : vector<11x3xbf16> to vector<11x3xf32>
    %322 = vector.extract_strided_slice %321 {offsets = [0, 0], sizes = [8, 3], strides = [1, 1]} : vector<11x3xf32> to vector<8x3xf32>
    %323 = arith.truncf %322 : vector<8x3xf32> to vector<8x3xbf16>
    %c22 = arith.constant 22 : index
    %c0_176 = arith.constant 0 : index
    %c0_177 = arith.constant 0 : index
    %324 = vector.load %arg6[%c22, %c0_176, %c0_177] : memref<49x3x64xbf16, #tpu.memory_space<vmem>>, vector<1x3x64xbf16>
    %325 = vector.shape_cast %324 : vector<1x3x64xbf16> to vector<3x64xbf16>
    %cst_178 = arith.constant dense<0.000000e+00> : vector<8x64xf32>
    %326 = tpu.matmul %323, %325, %cst_178 {dimension_numbers = #tpu.dot_dimension_numbers<[1], [0], [0], [1], [0, 0, 1, 1], [], []>} : vector<8x3xbf16>, vector<3x64xbf16>, vector<8x64xf32> -> vector<8x64xf32>
    %327 = arith.addf %316, %326 : vector<8x64xf32>
    %328 = vector.extract_strided_slice %321 {offsets = [1, 0], sizes = [8, 3], strides = [1, 1]} : vector<11x3xf32> to vector<8x3xf32>
    %329 = arith.truncf %328 : vector<8x3xf32> to vector<8x3xbf16>
    %c24 = arith.constant 24 : index
    %c0_179 = arith.constant 0 : index
    %c0_180 = arith.constant 0 : index
    %330 = vector.load %arg6[%c24, %c0_179, %c0_180] : memref<49x3x64xbf16, #tpu.memory_space<vmem>>, vector<1x3x64xbf16>
    %331 = vector.shape_cast %330 : vector<1x3x64xbf16> to vector<3x64xbf16>
    %cst_181 = arith.constant dense<0.000000e+00> : vector<8x64xf32>
    %332 = tpu.matmul %329, %331, %cst_181 {dimension_numbers = #tpu.dot_dimension_numbers<[1], [0], [0], [1], [0, 0, 1, 1], [], []>} : vector<8x3xbf16>, vector<3x64xbf16>, vector<8x64xf32> -> vector<8x64xf32>
    %333 = arith.addf %327, %332 : vector<8x64xf32>
    %334 = vector.extract_strided_slice %321 {offsets = [2, 0], sizes = [8, 3], strides = [1, 1]} : vector<11x3xf32> to vector<8x3xf32>
    %335 = arith.truncf %334 : vector<8x3xf32> to vector<8x3xbf16>
    %c26 = arith.constant 26 : index
    %c0_182 = arith.constant 0 : index
    %c0_183 = arith.constant 0 : index
    %336 = vector.load %arg6[%c26, %c0_182, %c0_183] : memref<49x3x64xbf16, #tpu.memory_space<vmem>>, vector<1x3x64xbf16>
    %337 = vector.shape_cast %336 : vector<1x3x64xbf16> to vector<3x64xbf16>
    %cst_184 = arith.constant dense<0.000000e+00> : vector<8x64xf32>
    %338 = tpu.matmul %335, %337, %cst_184 {dimension_numbers = #tpu.dot_dimension_numbers<[1], [0], [0], [1], [0, 0, 1, 1], [], []>} : vector<8x3xbf16>, vector<3x64xbf16>, vector<8x64xf32> -> vector<8x64xf32>
    %339 = arith.addf %333, %338 : vector<8x64xf32>
    %c2_i32_185 = arith.constant 2 : i32
    %340 = arith.addi %arg1, %c2_i32_185 : i32
    %c0_186 = arith.constant 0 : index
    %341 = arith.index_cast %340 : i32 to index
    %c0_187 = arith.constant 0 : index
    %c0_188 = arith.constant 0 : index
    %342 = vector.load %arg5[%c0_186, %341, %c0_187, %c0_188] : memref<1x11x11x3xbf16, #tpu.memory_space<vmem>>, vector<1x1x11x3xbf16>
    %343 = vector.shape_cast %342 : vector<1x1x11x3xbf16> to vector<11x3xbf16>
    %344 = arith.extf %343 : vector<11x3xbf16> to vector<11x3xf32>
    %345 = vector.extract_strided_slice %344 {offsets = [0, 0], sizes = [8, 3], strides = [1, 1]} : vector<11x3xf32> to vector<8x3xf32>
    %346 = arith.truncf %345 : vector<8x3xf32> to vector<8x3xbf16>
    %c36 = arith.constant 36 : index
    %c0_189 = arith.constant 0 : index
    %c0_190 = arith.constant 0 : index
    %347 = vector.load %arg6[%c36, %c0_189, %c0_190] : memref<49x3x64xbf16, #tpu.memory_space<vmem>>, vector<1x3x64xbf16>
    %348 = vector.shape_cast %347 : vector<1x3x64xbf16> to vector<3x64xbf16>
    %cst_191 = arith.constant dense<0.000000e+00> : vector<8x64xf32>
    %349 = tpu.matmul %346, %348, %cst_191 {dimension_numbers = #tpu.dot_dimension_numbers<[1], [0], [0], [1], [0, 0, 1, 1], [], []>} : vector<8x3xbf16>, vector<3x64xbf16>, vector<8x64xf32> -> vector<8x64xf32>
    %350 = arith.addf %339, %349 : vector<8x64xf32>
    %351 = vector.extract_strided_slice %344 {offsets = [1, 0], sizes = [8, 3], strides = [1, 1]} : vector<11x3xf32> to vector<8x3xf32>
    %352 = arith.truncf %351 : vector<8x3xf32> to vector<8x3xbf16>
    %c38 = arith.constant 38 : index
    %c0_192 = arith.constant 0 : index
    %c0_193 = arith.constant 0 : index
    %353 = vector.load %arg6[%c38, %c0_192, %c0_193] : memref<49x3x64xbf16, #tpu.memory_space<vmem>>, vector<1x3x64xbf16>
    %354 = vector.shape_cast %353 : vector<1x3x64xbf16> to vector<3x64xbf16>
    %cst_194 = arith.constant dense<0.000000e+00> : vector<8x64xf32>
    %355 = tpu.matmul %352, %354, %cst_194 {dimension_numbers = #tpu.dot_dimension_numbers<[1], [0], [0], [1], [0, 0, 1, 1], [], []>} : vector<8x3xbf16>, vector<3x64xbf16>, vector<8x64xf32> -> vector<8x64xf32>
    %356 = arith.addf %350, %355 : vector<8x64xf32>
    %357 = vector.extract_strided_slice %344 {offsets = [2, 0], sizes = [8, 3], strides = [1, 1]} : vector<11x3xf32> to vector<8x3xf32>
    %358 = arith.truncf %357 : vector<8x3xf32> to vector<8x3xbf16>
    %c40 = arith.constant 40 : index
    %c0_195 = arith.constant 0 : index
    %c0_196 = arith.constant 0 : index
    %359 = vector.load %arg6[%c40, %c0_195, %c0_196] : memref<49x3x64xbf16, #tpu.memory_space<vmem>>, vector<1x3x64xbf16>
    %360 = vector.shape_cast %359 : vector<1x3x64xbf16> to vector<3x64xbf16>
    %cst_197 = arith.constant dense<0.000000e+00> : vector<8x64xf32>
    %361 = tpu.matmul %358, %360, %cst_197 {dimension_numbers = #tpu.dot_dimension_numbers<[1], [0], [0], [1], [0, 0, 1, 1], [], []>} : vector<8x3xbf16>, vector<3x64xbf16>, vector<8x64xf32> -> vector<8x64xf32>
    %362 = arith.addf %356, %361 : vector<8x64xf32>
    %363 = arith.truncf %362 : vector<8x64xf32> to vector<8x64xbf16>
    %c0_198 = arith.constant 0 : index
    %c0_199 = arith.constant 0 : index
    %c0_200 = arith.constant 0 : index
    %c0_201 = arith.constant 0 : index
    %364 = vector.load %arg7[%c0_198, %c0_199, %c0_200, %c0_201] : memref<1x1x8x64xbf16, #tpu.memory_space<vmem>>, vector<1x1x8x64xbf16>
    %365 = vector.shape_cast %364 : vector<1x1x8x64xbf16> to vector<8x64xbf16>
    %366 = vector.shape_cast %363 : vector<8x64xbf16> to vector<1x1x8x64xbf16>
    tpu.vector_store %arg7[%c0_198, %c0_199, %c0_200, %c0_201], %366 {strides = array<i32>} : memref<1x1x8x64xbf16, #tpu.memory_space<vmem>>, vector<1x1x8x64xbf16>,
    %c0_i32_202 = arith.constant 0 : i32
    %367 = arith.cmpi eq, %arg1, %c0_i32_202 : i32
    %368 = arith.extui %367 : i1 to i32
    %c0_i32_203 = arith.constant 0 : i32
    %369 = arith.cmpi ne, %368, %c0_i32_203 : i32
    scf.if %369 {
      %cst_218 = arith.constant 0.000000e+00 : f32
      %387 = vector.broadcast %cst_218 : f32 to vector<1x1x64xf32>
      %c0_219 = arith.constant 0 : index
      %c0_220 = arith.constant 0 : index
      %c0_221 = arith.constant 0 : index
      %388 = vector.load %arg8[%c0_219, %c0_220, %c0_221] : memref<1x1x64xf32, #tpu.memory_space<vmem>>, vector<1x1x64xf32>
      tpu.vector_store %arg8[%c0_219, %c0_220, %c0_221], %387 {strides = array<i32>} : memref<1x1x64xf32, #tpu.memory_space<vmem>>, vector<1x1x64xf32>,
      %cst_222 = arith.constant 0.000000e+00 : f32
      %389 = vector.broadcast %cst_222 : f32 to vector<1x1x64xf32>
      %c0_223 = arith.constant 0 : index
      %c0_224 = arith.constant 0 : index
      %c0_225 = arith.constant 0 : index
      %390 = vector.load %arg9[%c0_223, %c0_224, %c0_225] : memref<1x1x64xf32, #tpu.memory_space<vmem>>, vector<1x1x64xf32>
      tpu.vector_store %arg9[%c0_223, %c0_224, %c0_225], %389 {strides = array<i32>} : memref<1x1x64xf32, #tpu.memory_space<vmem>>, vector<1x1x64xf32>,
    } else {
    }
    %c0_204 = arith.constant 0 : index
    %c0_205 = arith.constant 0 : index
    %c0_206 = arith.constant 0 : index
    %370 = vector.load %arg8[%c0_204, %c0_205, %c0_206] : memref<1x1x64xf32, #tpu.memory_space<vmem>>, vector<1x1x64xf32>
    %371 = vector.shape_cast %370 : vector<1x1x64xf32> to vector<1x64xf32>
    %cst_207 = arith.constant dense<0.000000e+00> : vector<64xf32>
    %372 = vector.multi_reduction <add>, %362, %cst_207 [0] : vector<8x64xf32> to vector<64xf32>
    %373 = vector.shape_cast %372 : vector<64xf32> to vector<1x64xf32>
    %374 = arith.addf %371, %373 : vector<1x64xf32>
    %c0_208 = arith.constant 0 : index
    %c0_209 = arith.constant 0 : index
    %c0_210 = arith.constant 0 : index
    %375 = vector.load %arg8[%c0_208, %c0_209, %c0_210] : memref<1x1x64xf32, #tpu.memory_space<vmem>>, vector<1x1x64xf32>
    %376 = vector.shape_cast %375 : vector<1x1x64xf32> to vector<1x64xf32>
    %377 = vector.shape_cast %374 : vector<1x64xf32> to vector<1x1x64xf32>
    tpu.vector_store %arg8[%c0_208, %c0_209, %c0_210], %377 {strides = array<i32>} : memref<1x1x64xf32, #tpu.memory_space<vmem>>, vector<1x1x64xf32>,
    %c0_211 = arith.constant 0 : index
    %c0_212 = arith.constant 0 : index
    %c0_213 = arith.constant 0 : index
    %378 = vector.load %arg9[%c0_211, %c0_212, %c0_213] : memref<1x1x64xf32, #tpu.memory_space<vmem>>, vector<1x1x64xf32>
    %379 = vector.shape_cast %378 : vector<1x1x64xf32> to vector<1x64xf32>
    %380 = arith.mulf %362, %362 : vector<8x64xf32>
    %cst_214 = arith.constant dense<0.000000e+00> : vector<64xf32>
    %381 = vector.multi_reduction <add>, %380, %cst_214 [0] : vector<8x64xf32> to vector<64xf32>
    %382 = vector.shape_cast %381 : vector<64xf32> to vector<1x64xf32>
    %383 = arith.addf %379, %382 : vector<1x64xf32>
    %c0_215 = arith.constant 0 : index
    %c0_216 = arith.constant 0 : index
    %c0_217 = arith.constant 0 : index
    %384 = vector.load %arg9[%c0_215, %c0_216, %c0_217] : memref<1x1x64xf32, #tpu.memory_space<vmem>>, vector<1x1x64xf32>
    %385 = vector.shape_cast %384 : vector<1x1x64xf32> to vector<1x64xf32>
    %386 = vector.shape_cast %383 : vector<1x64xf32> to vector<1x1x64xf32>
    tpu.vector_store %arg9[%c0_215, %c0_216, %c0_217], %386 {strides = array<i32>} : memref<1x1x64xf32, #tpu.memory_space<vmem>>, vector<1x1x64xf32>,
    return
  }
  func.func @transform_0(%arg0: i32, %arg1: i32) -> (i32, i32, i32, i32) {
    %c0_i32 = arith.constant 0 : i32
    %c0_i32_0 = arith.constant 0 : i32
    %c0_i32_1 = arith.constant 0 : i32
    %c0_i32_2 = arith.constant 0 : i32
    return %arg0, %c0_i32, %c0_i32_0, %c0_i32_1 : i32, i32, i32, i32
  }
  func.func @transform_1(%arg0: i32, %arg1: i32) -> (i32, i32, i32, i32) {
    %c0_i32 = arith.constant 0 : i32
    %c0_i32_0 = arith.constant 0 : i32
    %c0_i32_1 = arith.constant 0 : i32
    %c0_i32_2 = arith.constant 0 : i32
    return %arg0, %c0_i32, %c0_i32_0, %c0_i32_1 : i32, i32, i32, i32
  }
  func.func @transform_2(%arg0: i32, %arg1: i32) -> (i32, i32, i32, i32) {
    %c0_i32 = arith.constant 0 : i32
    %c0_i32_0 = arith.constant 0 : i32
    %c0_i32_1 = arith.constant 0 : i32
    %c0_i32_2 = arith.constant 0 : i32
    return %arg0, %c0_i32, %c0_i32_0, %c0_i32_1 : i32, i32, i32, i32
  }
  func.func @transform_3(%arg0: i32, %arg1: i32) -> (i32, i32, i32, i32) {
    %c0_i32 = arith.constant 0 : i32
    %c0_i32_0 = arith.constant 0 : i32
    %c0_i32_1 = arith.constant 0 : i32
    %c0_i32_2 = arith.constant 0 : i32
    return %arg0, %c0_i32, %c0_i32_0, %c0_i32_1 : i32, i32, i32, i32
  }
  func.func @transform_4(%arg0: i32, %arg1: i32) -> (i32, i32, i32) {
    %c0_i32 = arith.constant 0 : i32
    %c0_i32_0 = arith.constant 0 : i32
    %c0_i32_1 = arith.constant 0 : i32
    %c0_i32_2 = arith.constant 0 : i32
    return %c0_i32, %c0_i32_0, %c0_i32_1 : i32, i32, i32
  }
  func.func @transform_5(%arg0: i32, %arg1: i32) -> (i32, i32, i32, i32) {
    %c0_i32 = arith.constant 0 : i32
    %c0_i32_0 = arith.constant 0 : i32
    %c0_i32_1 = arith.constant 0 : i32
    return %arg0, %arg1, %c0_i32, %c0_i32_0 : i32, i32, i32, i32
  }
  func.func @transform_6(%arg0: i32, %arg1: i32) -> (i32, i32, i32) {
    %c0_i32 = arith.constant 0 : i32
    %c0_i32_0 = arith.constant 0 : i32
    %c0_i32_1 = arith.constant 0 : i32
    return %arg0, %c0_i32, %c0_i32_0 : i32, i32, i32
  }
  func.func @transform_7(%arg0: i32, %arg1: i32) -> (i32, i32, i32) {
    %c0_i32 = arith.constant 0 : i32
    %c0_i32_0 = arith.constant 0 : i32
    %c0_i32_1 = arith.constant 0 : i32
    return %arg0, %c0_i32, %c0_i32_0 : i32, i32, i32
  }
}

</mosaic_0001>

<bundles_post_ra>
// kernel: tpu_custom_call.1
= control target key start
LH: loop header
LB: loop body
LE: loop exit
PB: predicated region body
PF: predicated region fallthrough
CT: control target
= control target key end

     0   :  { %s5027_s0 = inlined_call_operand.vmem [shape: bf16[2,11,11,3], index: 0, kind: input, shape index: {}]   ;;  %s5028_s1 = inlined_call_operand.vmem [shape: bf16[2,11,11,3], index: 1, kind: input, shape index: {}]   ;;  %s5029_s2 = inlined_call_operand.vmem [shape: bf16[2,11,11,3], index: 2, kind: input, shape index: {}]   ;;  %s5030_s3 = inlined_call_operand.vmem [shape: bf16[2,11,11,3], index: 3, kind: input, shape index: {}]   ;;  %s5031_s4 = inlined_call_operand.vmem [shape: bf16[49,3,64], index: 4, kind: input, shape index: {}]   ;;  %s5032_s5 = inlined_call_operand.hbm [shape: bf16[2,8,8,64], index: 5, kind: output, shape index: {0}]   ;;  %s5033_s6 = inlined_call_operand.hbm [shape: f32[2,1,64], index: 6, kind: output, shape index: {1}]   ;;  %s5034_s7 = inlined_call_operand.hbm [shape: f32[2,1,64], index: 7, kind: output, shape index: {2}]  }
   0x1   :  { %5043 = sst [smem:[#allocation14_spill]] %s5027_s0 }
   0x2   :  { %5044 = sst [smem:[#allocation15_spill]] %s5028_s1 }
   0x3   :  { %5045 = sst [smem:[#allocation16_spill]] %s5029_s2 }
   0x4   :  { %5046 = sst [smem:[#allocation17_spill]] %s5030_s3 }
   0x5   :  { %13 = vsyncpa [#allocation3], 0 }
   0x6   :  { %15 = vsyncpa [#allocation3 + $0x1], 0 }
   0x7   :  { %16 = vsyncpa [#allocation5], 0 }
   0x8   :  { %18 = vsyncpa [#allocation5 + $0x1], 0  ;;  %s4252_s24 = smov 0   ;;  %s4254_s25 = smov 0  }
   0x9   :  { %s4256_s26 = smov 0   ;;  %s4258_s27 = smov 0  }
   0xa   :  { %s4260_s28 = smov 0   ;;  %s4262_s29 = smov 0  }
   0xb   :  { %s4264_s30 = smov 0   ;;  %s4266_s8 = smov 0  }
   0xc   :  { %s4268_s9 = smov 0   ;;  %s4270_s10 = smov 0  }
   0xd   :  { %s4272_s11 = smov 0  }
   0xe LB: > { %5047 = sst [smem:[#allocation9_spill]] %s4175_s27  ;;  %s5035_s12 = sadd.s32 4294967295, %s4203_s11   ;;  %s4203_s11 = sphi %s4272_s11, %s24_s11   ;;  %s4199_s10 = sphi %s4270_s10, %s5073_s10   ;;  %s4195_s9 = sphi %s4268_s9, %s5080_s9   ;;  %s4191_s8 = sphi %s4266_s8, %s5071_s8   ;;  %s4187_s30 = sphi %s4264_s30, %s5070_s30   ;;  %s4183_s29 = sphi %s4262_s29, %s5079_s29   ;;  %s4179_s28 = sphi %s4260_s28, %s5078_s28   ;;  %s4175_s27 = sphi %s4258_s27, %s5077_s27   ;;  %s4171_s26 = sphi %s4256_s26, %s5076_s26   ;;  %s4167_s25 = sphi %s4254_s25, %s5075_s25   ;;  %s4163_s24 = sphi %s4252_s24, %s5074_s24  }
   0xf   : > { %5048 = sst [smem:[#allocation10_spill]] %s4195_s9  ;;  %s5036_s13 = sadd.s32 4294967294, %s4203_s11  }
  0x10   : > { %5049 = sst [smem:[#allocation11_spill]] %s4199_s10  ;;  %s33_s14 = sadd.s32 1, %s4195_s9 }
  0x11   : > { %s36_s15 = sadd.s32 1, %s4199_s10  ;;  %p34_p0 = scmp.ge.s32.totalorder %s33_s14, 8 }
  0x12   : > { %s170_s16 = sadd.s32 1, %s4183_s29  ;;  %p180_p1 = scmp.ne.s32.totalorder %s4183_s29, %s4179_s28 }
  0x13   : > { %p4316_p2 = scmp.eq.s32.totalorder %s5035_s12, 15  ;;  %s5082_s14 = smov (%p34_p0, %s33_s14), 0 }
  0x14   : > { %5051 = sst [smem:[#allocation12_spill]] %s5082_s14  ;;  %s5084_s15 = smov (!%p34_p0, %s36_s15), %s4199_s10 }
  0x15   : > { %s166_s18 = ssub.s32 %s4195_s9, %s5082_s14  ;;  %p4327_p3 = por %p4316_p2, %p180_p1 }
  0x16   : > { %p38_p4 = scmp.ge.s32.totalorder %s5084_s15, 2  ;;  %p186_p5 = scmp.ne.s32.totalorder %s4179_s28, %s4175_s27 }
  0x17   : > { %p4335_p6 = scmp.eq.s32.totalorder %s5036_s13, 15  ;;  %s196_s21 = sadd.s32 1, %s4171_s26 }
  0x18   : > { %s5086_s15 = smov (%p38_p4, %s5084_s15), 0  ;;  %p206_p8 = scmp.ne.s32.totalorder %s4171_s26, %s4167_s25 }
  0x19   : > { %5054 = sst [smem:[#allocation13_spill]] %s5086_s15  ;;  %p4344_p7 = por %p4335_p6, %p186_p5 }
  0x1a   : > { %s165_s23 = ssub.s32 %s4199_s10, %s5086_s15  ;;  %p212_p9 = scmp.ne.s32.totalorder %s4167_s25, %s4163_s24 }
  0x1b   : > { %s5055_s22 = scalar_select %p4344_p7, 1, 0 }
  0x1c   : > { %s167_s12 = sor.u32 %s166_s18, %s165_s23  ;;  %p194_p10 = scmp.eq.s32.totalorder %s165_s23, 0 }
  0x1d   : > { %p168_p11 = scmp.eq.s32.totalorder %s167_s12, 0  ;;  %p4356_p12 = por %p206_p8, %p4316_p2 }
  0x1e   : > { %s4361_s14 = scalar_select %p194_p10, %s4171_s26, %s196_s21  }
  0x1f   : > { %s4364_s9 = scalar_select %p168_p11, %s4183_s29, %s170_s16  }
  0x20   : > { %p4368_p13 = por %p212_p9, %p4335_p6  ;;  %p3323_p0 = scmp.ge.s32.totalorder %s4203_s11, 1 }
  0x21   : > { %p292_p1 = scmp.lt.s32.totalorder %s4203_s11, 17 }
  0x22   : > { %s5057_s27 = scalar_select %p4368_p13, 1, 0 }
  0x23   : > { %p293_p4 = pnand %p3323_p0, %p292_p1 }
  0x24   : > { %p347_p2 = scmp.lt.s32.totalorder (!%p293_p4), %s4191_s8, 1  ;;  %s4396_s23 = sshll.u32 (!%p293_p4), %s4187_s30, 3 }
  0x25   : > { %296 = sbr.rel (%p293_p4) target bundleno = 522 (0x20a), region = 40  ;;  %s5058_s0 = sld [smem:[#allocation14_spill]] (!%p293_p4) }
  0x26   : > { %s5059_s2 = sld [smem:[#allocation16_spill]] (!%p293_p4)  ;;  %s5042_s15 = sand.u32 (!%p293_p4), 1, %s4179_s28  }
  0x27   : > { %s5060_s3 = sld [smem:[#allocation17_spill]] (!%p293_p4)  ;;  %p3489_p5 = scmp.ne.s32.totalorder (!%p293_p4), %s4187_s30, 0 }
  0x28   : > { %s5061_s1 = sld [smem:[#allocation15_spill]] (!%p293_p4) }
  0x2a   : > { %v3333_v0 = vld [vmem:[%s5031_s4 + $0x4] sm:$0x3]  ;;  %vm391_vm0 = vcmask 1040384   ;;  %vm392_vm1 = vcmask 1041408   ;;  %v4205_v1 = vmov 0.0   ;;  %v4206_v3 = vmov 65535  }
  0x2b   : > { %3599 = vmatprep.subr.bf16.mxu0 %v4205_v1  ;;  %3605 = vmatprep.subr.bf16.mxu1 %v4205_v1  ;;  %v376_v2 = vld [vmem:[%s5031_s4] sm:$0x3]  ;;  %v393_v4 = vsel %vm391_vm0, 4294967295, %v4206_v3  ;;  %vm4207_vm2 = vmmov 0   ;;  %s348_s20 = scalar_select %p347_p2, %s4191_s8, 1  ;;  %vm387_vm3 = vcmask 23552  }
  0x2c   : > { %3601 = vmatprep.mubr.msk.bf16.mxu0 %vm4207_vm2, %v4205_v1  ;;  %3607 = vmatprep.mubr.msk.bf16.mxu1 %vm4207_vm2, %v4205_v1  ;;  %v4388_v5 = vsel %vm392_vm1, %v393_v4, 0  ;;  %v3338_v8 = vld [vmem:[%s5031_s4 + $0xc] sm:$0x3]  ;;  %v3336_v18 = vld [vmem:[%s5031_s4 + $0x8] sm:$0x3]  ;;  %vm3038_vm4 = vcmask 519168  }
  0x2d   : > { %v396_v6 = vand.u32 %v3333_v0, %v4388_v5  ;;  %v442_v7 = vand.u32 %v4388_v5, %v376_v2  ;;  %s4393_s21 = smul.u32 88, %s348_s20  ;;  %v544_v11 = vand.u32 %v3338_v8, %v4388_v5  ;;  %v3347_v23 = vld [vmem:[%s5031_s4 + $0x20] sm:$0x3]  ;;  %v492_v24 = vand.u32 %v3336_v18, %v4388_v5  ;;  %v3344_v29 = vld [vmem:[%s5031_s4 + $0x1c] sm:$0x3] }
  0x2e   : > { %v659_v28 = vand.u32 %v3347_v23, %v4388_v5  ;;  %v3351_v33 = vld [vmem:[%s5031_s4 + $0x28] sm:$0x3]  ;;  %v602_v34 = vand.u32 %v3344_v29, %v4388_v5  ;;  %v3349_v39 = vld [vmem:[%s5031_s4 + $0x24] sm:$0x3]  ;;  %v3360_v44 = vld [vmem:[%s5031_s4 + $0x3c] sm:$0x3] }
  0x2f   : > { %3600 = vmatpush3.bf16.msra.mxu0 %v396_v6  ;;  %3606 = vmatpush3.bf16.msra.mxu1 %v442_v7  ;;  %s351_s24 = scalar_lea.vmem %s5058_s0, %s4393_s21  ;;  %s361_s12 = scalar_lea.vmem %s5059_s2, %s4393_s21  ;;  %v762_v36 = vand.u32 %v3351_v33, %v4388_v5  ;;  %v710_v45 = vand.u32 %v3349_v39, %v4388_v5  ;;  %v877_v48 = vand.u32 %v3360_v44, %v4388_v5  ;;  %v3357_v49 = vld [vmem:[%s5031_s4 + $0x38] sm:$0x3]  ;;  %v3364_v53 = vld [vmem:[%s5031_s4 + $0x44] sm:$0x3]  ;;  %v3362_v59 = vld [vmem:[%s5031_s4 + $0x40] sm:$0x3] }
  0x30   : > { %3611 = vmatprep.subr.bf16.mxu0 %v4205_v1  ;;  %3617 = vmatprep.subr.bf16.mxu1 %v4205_v1  ;;  %s4408_s20 = scalar_lea.vmem %s351_s24, %s4396_s23  ;;  %s4420_s17 = scalar_lea.vmem %s361_s12, %s4396_s23  ;;  %v820_v54 = vand.u32 %v3357_v49, %v4388_v5  ;;  %v980_v56 = vand.u32 %v3364_v53, %v4388_v5  ;;  %v3373_v0 = vld [vmem:[%s5031_s4 + $0x58] sm:$0x3]  ;;  %v928_v2 = vand.u32 %v3362_v59, %v4388_v5  ;;  %v3370_v7 = vld [vmem:[%s5031_s4 + $0x54] sm:$0x3] }
  0x31   : > { %v371_v9 = vld [vmem:[%s4408_s20] sm:$0xf]  ;;  %v372_v10 = vld [vmem:[%s4408_s20 + $0x4] sm:$0x3]  ;;  %v3341_v12 = vld [vmem:[%s4408_s20 + $0x8] sm:$0xf]  ;;  %s366_s24 = scalar_lea.vmem %s5060_s3, %s4393_s21  ;;  %v1095_v6 = vand.u32 %v3373_v0, %v4388_v5  ;;  %s356_s10 = scalar_lea.vmem %s5061_s1, %s4393_s21 }
  0x32   : > { %v3332_v13 = vcombine.low %v371_v9, %v372_v10  ;;  %v3331_v14 = vcombine.low %v371_v9, %v371_v9  ;;  %v3342_v15 = vld [vmem:[%s4408_s20 + $0xc] sm:$0x3]  ;;  %v3354_v37 = vld [vmem:[%s4408_s20 + $0x10] sm:$0xf]  ;;  %v3355_v38 = vld [vmem:[%s4408_s20 + $0x14] sm:$0x3]  ;;  %v3343_v43 = vcombine.low %v3341_v12, %v3341_v12  ;;  %s4500_s16 = scalar_lea.vmem %s366_s24, %s4396_s23  ;;  %s4542_s12 = scalar_lea.vmem %s356_s10, %s4396_s23 }
  0x33   : > { %v4426_v19 = vcombine.low %v3341_v12, %v3342_v15  ;;  %v4464_v42 = vcombine.low %v3354_v37, %v3355_v38  ;;  %v3367_v57 = vld [vmem:[%s4408_s20 + $0x18] sm:$0xf]  ;;  %v3368_v58 = vld [vmem:[%s4408_s20 + $0x1c] sm:$0x3]  ;;  %v3356_v63 = vcombine.low %v3354_v37, %v3354_v37  ;;  %v1038_v12 = vand.u32 %v3370_v7, %v4388_v5  ;;  %v1243_v15 = vld [vmem:[%s4542_s12] sm:$0xf] }
  0x34   : > { %v381_v16 = vshrl.u32 %v3332_v13, 16  ;;  %v383_v17 = vshll.u32 %v3332_v13, 16  ;;  %3608 = vmatmul.mubr.msk.bf16.vlgmr.msra.gmra.mxu1 %vm387_vm3, %v3331_v14  ;;  %v487_v32 = vrot.slane %v3332_v13, 1  ;;  %v4510_v62 = vcombine.low %v3367_v57, %v3368_v58  ;;  %v3397_v38 = vld [vmem:[%s5031_s4 + $0x26] sm:$0x3]  ;;  %s3324_s20 = sshll.u32 %s5042_s15, 2 }
  0x35   : > { %3618 = vmatpush3.bf16.msra.mxu1 %v544_v11  ;;  %3619 = vmatprep.mubr.msk.bf16.mxu1 %vm4207_vm2, %v4205_v1  ;;  %v651_v27 = vshll.u32 %v4426_v19, 16  ;;  %v649_v30 = vshrl.u32 %v4426_v19, 16  ;;  %v869_v47 = vshll.u32 %v4464_v42, 16  ;;  %v867_v50 = vshrl.u32 %v4464_v42, 16  ;;  %v3377_v11 = vld [vmem:[%s5031_s4 + $0x60] sm:$0x3] }
  0x36   : > { %v385_v20 = vrot.slane %v383_v17, 1  ;;  %v537_v21 = vrot.slane %v381_v16, 1  ;;  %v538_v22 = vrot.slane %v383_v17, 2  ;;  %3629 = vmatprep.subr.bf16.mxu1 %v4205_v1  ;;  %v705_v52 = vrot.slane %v4426_v19, 1  ;;  %v3375_v17 = vld [vmem:[%s5031_s4 + $0x5c] sm:$0x3] }
  0x37   : > { %v653_v31 = vrot.slane %v651_v27, 1  ;;  %v755_v40 = vrot.slane %v649_v30, 1  ;;  %v756_v41 = vrot.slane %v651_v27, 2  ;;  %v871_v51 = vrot.slane %v869_v47, 1  ;;  %v3381_v27 = vld [vmem:[%s5031_s4 + $0x2] sm:$0x3] }
  0x38   : > { %v386_v25 = vor.u32 %v385_v20, %v381_v16  ;;  %v539_v26 = vor.u32 %v538_v22, %v537_v21  ;;  %v973_v60 = vrot.slane %v867_v50, 1  ;;  %v974_v61 = vrot.slane %v869_v47, 2  ;;  %v1244_v16 = vld [vmem:[%s4542_s12 + $0x4] sm:$0x3]  ;;  %v3384_v22 = vld [vmem:[%s5031_s4 + $0x6] sm:$0x3] }
  0x39   : > { %v654_v35 = vor.u32 %v653_v31, %v649_v30  ;;  %v757_v46 = vor.u32 %v756_v41, %v755_v40  ;;  %v872_v55 = vor.u32 %v871_v51, %v867_v50  ;;  %v1087_v4 = vshll.u32 %v4510_v62, 16  ;;  %v3392_v31 = vld [vmem:[%s5031_s4 + $0x1e] sm:$0x3]  ;;  %v3390_v40 = vld [vmem:[%s4542_s12 + $0xc] sm:$0x3] }
  0x3a   : > { %3602 = vmatmul.mubr.msk.bf16.vlgmr.msra.gmra.mxu0 %vm387_vm3, %v386_v25  ;;  %v975_v3 = vor.u32 %v974_v61, %v973_v60  ;;  %v1085_v8 = vshrl.u32 %v4510_v62, 16  ;;  %v923_v10 = vrot.slane %v4464_v42, 1  ;;  %v1198_v14 = vand.u32 %v3377_v11, %v4388_v5  ;;  %v3401_v44 = vld [vmem:[%s4542_s12 + $0x14] sm:$0x3]  ;;  %v3406_v50 = vld [vmem:[%s5031_s4 + $0x3e] sm:$0x3] }
  0x3b   : > { %3612 = vmatpush3.bf16.msra.mxu0 %v492_v24  ;;  %3613 = vmatprep.mubr.msk.bf16.mxu0 %vm4207_vm2, %v4205_v1  ;;  %v1089_v9 = vrot.slane %v1087_v4, 1  ;;  %v1192_v19 = vrot.slane %v1087_v4, 2  ;;  %v4556_v20 = vcombine.low %v1243_v15, %v1244_v16  ;;  %v3369_v21 = vcombine.low %v3367_v57, %v3367_v57  ;;  %v3403_v57 = vld [vmem:[%s5031_s4 + $0x3a] sm:$0x3]  ;;  %v3414_v61 = vld [vmem:[%s5031_s4 + $0x56] sm:$0x3] }
  0x3c   : > { %3623 = vmatprep.subr.bf16.mxu0 %v4205_v1  ;;  %3620 = vmatmul.mubr.msk.bf16.vlgmr.msra.gmra.mxu1 %vm387_vm3, %v539_v26  ;;  %v1191_v18 = vrot.slane %v1085_v8, 1  ;;  %v1146_v23 = vand.u32 %v3375_v17, %v4388_v5  ;;  %v1311_v26 = vand.u32 %v3384_v22, %v4388_v5  ;;  %v1141_v30 = vrot.slane %v4510_v62, 1  ;;  %v1899_v11 = vld [vmem:[%s4420_s17] sm:$0xf] }
  0x3d   : > { %3630 = vmatpush3.bf16.msra.mxu1 %v659_v28  ;;  %3631 = vmatprep.mubr.msk.bf16.mxu1 %vm4207_vm2, %v4205_v1  ;;  %v1090_v13 = vor.u32 %v1089_v9, %v1085_v8  ;;  %v1303_v25 = vshll.u32 %v4556_v20, 16  ;;  %v1301_v28 = vshrl.u32 %v4556_v20, 16  ;;  %v3380_v37 = vcombine.low %v1243_v15, %v1243_v15  ;;  %v3412_v8 = vld [vmem:[%s4542_s12 + $0x1c] sm:$0x3] }
  0x3e   : > { %3641 = vmatprep.subr.bf16.mxu1 %v4205_v1  ;;  %v1193_v24 = vor.u32 %v1192_v19, %v1191_v18  ;;  %v1526_v42 = vand.u32 %v3397_v38, %v4388_v5  ;;  %v1582_v62 = vand.u32 %v3403_v57, %v4388_v5  ;;  %v1746_v0 = vand.u32 %v3414_v61, %v4388_v5  ;;  %v3426_v18 = vld [vmem:[%s5031_s4 + $0x12] sm:$0x3] }
  0x3f   : > { %v1305_v29 = vrot.slane %v1303_v25, 1  ;;  %v1967_v22 = vand.u32 %v3426_v18, %v4388_v5  ;;  %v3423_v25 = vld [vmem:[%s5031_s4 + $0xe] sm:$0x3]  ;;  %v3463_v18 = vld [vmem:[%s5031_s4 + $0x14] sm:$0x3] }
  0x41   : > { %v1306_v33 = vor.u32 %v1305_v29, %v1301_v28  ;;  %v3430_v29 = vld [vmem:[%s5031_s4 + $0x1a] sm:$0x3] }
  0x42   : > { %3614 = vmatmul.mubr.msk.bf16.vlgmr.msra.gmra.mxu0 %vm387_vm3, %v487_v32  ;;  %v1254_v32 = vand.u32 %v3381_v27, %v4388_v5 }
  0x43   : > { %3624 = vmatpush3.bf16.msra.mxu0 %v602_v34  ;;  %3625 = vmatprep.mubr.msk.bf16.mxu0 %vm4207_vm2, %v4205_v1  ;;  %v1418_v34 = vand.u32 %v3392_v31, %v4388_v5 }
  0x44   : > { %3635 = vmatprep.subr.bf16.mxu0 %v4205_v1  ;;  %3632 = vmatmul.mubr.msk.bf16.vlgmr.msra.gmra.mxu1 %vm387_vm3, %v654_v35  ;;  %v3386_v35 = vld [vmem:[%s5031_s4 + $0xa] sm:$0x3] }
  0x45   : > { %3642 = vmatpush3.bf16.msra.mxu1 %v762_v36  ;;  %3643 = vmatprep.mubr.msk.bf16.mxu1 %vm4207_vm2, %v4205_v1  ;;  %v3389_v36 = vld [vmem:[%s4542_s12 + $0x8] sm:$0xf]  ;;  %v1362_v39 = vand.u32 %v3386_v35, %v4388_v5  ;;  %v3428_v35 = vld [vmem:[%s5031_s4 + $0x16] sm:$0x3] }
  0x46   : > { %3653 = vmatprep.subr.bf16.mxu1 %v4205_v1  ;;  %v3391_v41 = vcombine.low %v3389_v36, %v3389_v36 }
  0x4a   : > { %3626 = vmatmul.mubr.msk.bf16.vlgmr.msra.gmra.mxu0 %vm387_vm3, %v3343_v43  ;;  %v3400_v43 = vld [vmem:[%s4542_s12 + $0x10] sm:$0xf] }
  0x4b   : > { %3636 = vmatpush3.bf16.msra.mxu0 %v710_v45  ;;  %3637 = vmatprep.mubr.msk.bf16.mxu0 %vm4207_vm2, %v4205_v1  ;;  %v3394_v45 = vcombine.low %v3389_v36, %v3390_v40  ;;  %v4613_v47 = vcombine.low %v3400_v43, %v3401_v44  ;;  %v3402_v4 = vcombine.low %v3400_v43, %v3400_v43  ;;  %v3439_v40 = vld [vmem:[%s5031_s4 + $0x2e] sm:$0x3] }
  0x4c   : > { %3647 = vmatprep.subr.bf16.mxu0 %v4205_v1  ;;  %3644 = vmatmul.mubr.msk.bf16.vlgmr.msra.gmra.mxu1 %vm387_vm3, %v757_v46  ;;  %v3395_v46 = vld [vmem:[%s5031_s4 + $0x22] sm:$0x3]  ;;  %v2183_v44 = vand.u32 %v3439_v40, %v4388_v5  ;;  %v3480_v40 = vld [vmem:[%s4500_s16 + $0x14] sm:$0x3] }
  0x4d   : > { %3654 = vmatpush3.bf16.msra.mxu1 %v877_v48  ;;  %3655 = vmatprep.mubr.msk.bf16.mxu1 %vm4207_vm2, %v4205_v1  ;;  %v1357_v48 = vrot.slane %v4556_v20, 1  ;;  %v1467_v49 = vshll.u32 %v3394_v45, 16  ;;  %v1475_v51 = vand.u32 %v3395_v46, %v4388_v5  ;;  %v1631_v53 = vshll.u32 %v4613_v47, 16 }
  0x4e   : > { %3665 = vmatprep.subr.bf16.mxu1 %v4205_v1  ;;  %v1629_v58 = vshrl.u32 %v4613_v47, 16  ;;  %v1685_v16 = vrot.slane %v4613_v47, 1 }
  0x4f   : > { %v1633_v59 = vrot.slane %v1631_v53, 1  ;;  %v3446_v53 = vld [vmem:[%s4420_s17 + $0x10] sm:$0xf] }
  0x52   : > { %3638 = vmatmul.mubr.msk.bf16.vlgmr.msra.gmra.mxu0 %vm387_vm3, %v705_v52  ;;  %v1521_v52 = vrot.slane %v3394_v45, 1 }
  0x53   : > { %3648 = vmatpush3.bf16.msra.mxu0 %v820_v54  ;;  %3649 = vmatprep.mubr.msk.bf16.mxu0 %vm4207_vm2, %v4205_v1  ;;  %v1639_v54 = vand.u32 %v3406_v50, %v4388_v5 }
  0x54   : > { %3659 = vmatprep.subr.bf16.mxu0 %v4205_v1  ;;  %3656 = vmatmul.mubr.msk.bf16.vlgmr.msra.gmra.mxu1 %vm387_vm3, %v872_v55  ;;  %v1465_v55 = vshrl.u32 %v3394_v45, 16  ;;  %v3436_v45 = vld [vmem:[%s5031_s4 + $0x2a] sm:$0x3] }
  0x55   : > { %3666 = vmatpush3.bf16.msra.mxu1 %v980_v56  ;;  %3667 = vmatprep.mubr.msk.bf16.mxu1 %vm4207_vm2, %v4205_v1  ;;  %v1469_v56 = vrot.slane %v1467_v49, 1  ;;  %v3443_v49 = vld [vmem:[%s5031_s4 + $0x36] sm:$0x3]  ;;  %v2126_v50 = vand.u32 %v3436_v45, %v4388_v5 }
  0x56   : > { %3677 = vmatprep.subr.bf16.mxu1 %v4205_v1 }
  0x57   : > { %v1470_v60 = vor.u32 %v1469_v56, %v1465_v55  ;;  %v3441_v55 = vld [vmem:[%s5031_s4 + $0x32] sm:$0x3] }
  0x58   : > { %v2234_v61 = vand.u32 %v3441_v55, %v4388_v5 }
  0x5a   : > { %3650 = vmatmul.mubr.msk.bf16.vlgmr.msra.gmra.mxu0 %vm387_vm3, %v3356_v63  ;;  %v1634_v63 = vor.u32 %v1633_v59, %v1629_v58 }
  0x5b   : > { %3660 = vmatpush3.bf16.msra.mxu0 %v928_v2  ;;  %3661 = vmatprep.mubr.msk.bf16.mxu0 %vm4207_vm2, %v4205_v1  ;;  %v3408_v2 = vld [vmem:[%s5031_s4 + $0x42] sm:$0x3] }
  0x5c   : > { %3671 = vmatprep.subr.bf16.mxu0 %v4205_v1  ;;  %3668 = vmatmul.mubr.msk.bf16.vlgmr.msra.gmra.mxu1 %vm387_vm3, %v975_v3  ;;  %v3411_v3 = vld [vmem:[%s4542_s12 + $0x18] sm:$0xf]  ;;  %v1690_v7 = vand.u32 %v3408_v2, %v4388_v5  ;;  %v3449_v2 = vld [vmem:[%s5031_s4 + $0x46] sm:$0x3]  ;;  %s5062_s12 = sand.u32 1, %s4167_s25  }
  0x5d   : > { %3678 = vmatpush3.bf16.msra.mxu1 %v1095_v6  ;;  %3679 = vmatprep.mubr.msk.bf16.mxu1 %vm4207_vm2, %v4205_v1  ;;  %v3419_v6 = vld [vmem:[%s5031_s4 + $0x5e] sm:$0x3]  ;;  %v3413_v9 = vcombine.low %v3411_v3, %v3411_v3  ;;  %s5063_s21 = smov %s5062_s12 }
  0x5e   : > { %3689 = vmatprep.subr.bf16.mxu1 %v4205_v1  ;;  %s4886_s18 = scalar_lea.vmem [#allocation6], %s5063_s21 }
  0x62   : > { %3662 = vmatmul.mubr.msk.bf16.vlgmr.msra.gmra.mxu0 %vm387_vm3, %v923_v10  ;;  %v1854_v10 = vand.u32 %v3419_v6, %v4388_v5 }
  0x63   : > { %3672 = vmatpush3.bf16.msra.mxu0 %v1038_v12  ;;  %3673 = vmatprep.mubr.msk.bf16.mxu0 %vm4207_vm2, %v4205_v1  ;;  %v1900_v12 = vld [vmem:[%s4420_s17 + $0x4] sm:$0x3] }
  0x64   : > { %3683 = vmatprep.subr.bf16.mxu0 %v4205_v1  ;;  %3680 = vmatmul.mubr.msk.bf16.vlgmr.msra.gmra.mxu1 %vm387_vm3, %v1090_v13  ;;  %v3416_v13 = vcombine.low %v3411_v3, %v3412_v8  ;;  %v4670_v15 = vcombine.low %v1899_v11, %v1900_v12  ;;  %v2342_v8 = vand.u32 %v3449_v2, %v4388_v5  ;;  %v2548_v12 = vld [vmem:[%s4500_s16 + $0x4] sm:$0x3] }
  0x65   : > { %3690 = vmatpush3.bf16.msra.mxu1 %v1198_v14  ;;  %3691 = vmatprep.mubr.msk.bf16.mxu1 %vm4207_vm2, %v4205_v1  ;;  %v3417_v14 = vld [vmem:[%s5031_s4 + $0x5a] sm:$0x3] }
  0x66   : > { %3701 = vmatprep.subr.bf16.mxu1 %v4205_v1  ;;  %v1795_v17 = vshll.u32 %v3416_v13, 16  ;;  %v1803_v19 = vand.u32 %v3417_v14, %v4388_v5  ;;  %v1849_v20 = vrot.slane %v3416_v13, 1 }
  0x6a   : > { %3674 = vmatmul.mubr.msk.bf16.vlgmr.msra.gmra.mxu0 %vm387_vm3, %v3369_v21  ;;  %v1959_v21 = vshll.u32 %v4670_v15, 16 }
  0x6b   : > { %3684 = vmatpush3.bf16.msra.mxu0 %v1146_v23  ;;  %3685 = vmatprep.mubr.msk.bf16.mxu0 %vm4207_vm2, %v4205_v1  ;;  %v1793_v23 = vshrl.u32 %v3416_v13, 16  ;;  %v3454_v13 = vld [vmem:[%s5031_s4 + $0x4e] sm:$0x3] }
  0x6c   : > { %3695 = vmatprep.subr.bf16.mxu0 %v4205_v1  ;;  %3692 = vmatmul.mubr.msk.bf16.vlgmr.msra.gmra.mxu1 %vm387_vm3, %v1193_v24  ;;  %v1797_v24 = vrot.slane %v1795_v17, 1  ;;  %v1961_v27 = vrot.slane %v1959_v21, 1  ;;  %v3448_v17 = vcombine.low %v3446_v53, %v3446_v53 }
  0x6d   : > { %3702 = vmatpush3.bf16.msra.mxu1 %v1311_v26  ;;  %3703 = vmatprep.mubr.msk.bf16.mxu1 %vm4207_vm2, %v4205_v1  ;;  %v1957_v26 = vshrl.u32 %v4670_v15, 16 }
  0x6e   : > { %3713 = vmatprep.subr.bf16.mxu1 %v4205_v1  ;;  %v1798_v28 = vor.u32 %v1797_v24, %v1793_v23  ;;  %v3460_v23 = vld [vmem:[%s5031_s4 + $0x10] sm:$0x3] }
  0x6f   : > { %v1962_v31 = vor.u32 %v1961_v27, %v1957_v26  ;;  %v2063_v36 = vrot.slane %v1957_v26, 1  ;;  %v3471_v27 = vld [vmem:[%s5031_s4 + $0x2c] sm:$0x3] }
  0x72   : > { %3686 = vmatmul.mubr.msk.bf16.vlgmr.msra.gmra.mxu0 %vm387_vm3, %v1141_v30  ;;  %v1910_v30 = vand.u32 %v3423_v25, %v4388_v5 }
  0x73   : > { %3696 = vmatpush3.bf16.msra.mxu0 %v1254_v32  ;;  %3697 = vmatprep.mubr.msk.bf16.mxu0 %vm4207_vm2, %v4205_v1  ;;  %v2070_v32 = vand.u32 %v3430_v29, %v4388_v5 }
  0x74   : > { %3707 = vmatprep.subr.bf16.mxu0 %v4205_v1  ;;  %3704 = vmatmul.mubr.msk.bf16.vlgmr.msra.gmra.mxu1 %vm387_vm3, %v1306_v33  ;;  %v3433_v33 = vld [vmem:[%s4420_s17 + $0x8] sm:$0xf] }
  0x75   : > { %3714 = vmatpush3.bf16.msra.mxu1 %v1418_v34  ;;  %3715 = vmatprep.mubr.msk.bf16.mxu1 %vm4207_vm2, %v4205_v1  ;;  %v3434_v34 = vld [vmem:[%s4420_s17 + $0xc] sm:$0x3]  ;;  %v3435_v59 = vcombine.low %v3433_v33, %v3433_v33 }
  0x76   : > { %3725 = vmatprep.subr.bf16.mxu1 %v4205_v1  ;;  %v4709_v38 = vcombine.low %v3433_v33, %v3434_v34  ;;  %v3476_v34 = vld [vmem:[%s5031_s4 + $0x34] sm:$0x3] }
  0x78   : > { %v2175_v43 = vshll.u32 %v4709_v38, 16  ;;  %v2173_v46 = vshrl.u32 %v4709_v38, 16  ;;  %v2229_v6 = vrot.slane %v4709_v38, 1  ;;  %v2830_v38 = vand.u32 %v3476_v34, %v4388_v5 }
  0x7a   : > { %3698 = vmatmul.mubr.msk.bf16.vlgmr.msra.gmra.mxu0 %vm387_vm3, %v3380_v37  ;;  %v2064_v37 = vrot.slane %v1959_v21, 2  ;;  %v2177_v47 = vrot.slane %v2175_v43, 1  ;;  %v2279_v56 = vrot.slane %v2173_v46, 1  ;;  %v2280_v57 = vrot.slane %v2175_v43, 2 }
  0x7b   : > { %3708 = vmatpush3.bf16.msra.mxu0 %v1362_v39  ;;  %3709 = vmatprep.mubr.msk.bf16.mxu0 %vm4207_vm2, %v4205_v1  ;;  %v3422_v39 = vcombine.low %v1899_v11, %v1899_v11  ;;  %v2547_v11 = vld [vmem:[%s4500_s16] sm:$0xf] }
  0x7c   : > { %3719 = vmatprep.subr.bf16.mxu0 %v4205_v1  ;;  %3716 = vmatmul.mubr.msk.bf16.vlgmr.msra.gmra.mxu1 %vm387_vm3, %v3391_v41  ;;  %v2018_v41 = vand.u32 %v3428_v35, %v4388_v5  ;;  %v3459_v33 = vcombine.low %v2547_v11, %v2547_v11 }
  0x7d   : > { %3726 = vmatpush3.bf16.msra.mxu1 %v1526_v42  ;;  %3727 = vmatprep.mubr.msk.bf16.mxu1 %vm4207_vm2, %v4205_v1  ;;  %v2065_v42 = vor.u32 %v2064_v37, %v2063_v36  ;;  %v3469_v36 = vld [vmem:[%s4500_s16 + $0xc] sm:$0x3] }
  0x7e   : > { %3737 = vmatprep.subr.bf16.mxu1 %v4205_v1 }
  0x82   : > { %3710 = vmatmul.mubr.msk.bf16.vlgmr.msra.gmra.mxu0 %vm387_vm3, %v1357_v48  ;;  %v2013_v48 = vrot.slane %v4670_v15, 1 }
  0x83   : > { %3720 = vmatpush3.bf16.msra.mxu0 %v1475_v51  ;;  %3721 = vmatprep.mubr.msk.bf16.mxu0 %vm4207_vm2, %v4205_v1  ;;  %v2178_v51 = vor.u32 %v2177_v47, %v2173_v46  ;;  %v3485_v46 = vld [vmem:[%s5031_s4 + $0x4c] sm:$0x3] }
  0x84   : > { %3731 = vmatprep.subr.bf16.mxu0 %v4205_v1  ;;  %3728 = vmatmul.mubr.msk.bf16.vlgmr.msra.gmra.mxu1 %vm387_vm3, %v1521_v52  ;;  %v2286_v52 = vand.u32 %v3443_v49, %v4388_v5 }
  0x85   : > { %3738 = vmatpush3.bf16.msra.mxu1 %v1639_v54  ;;  %3739 = vmatprep.mubr.msk.bf16.mxu1 %vm4207_vm2, %v4205_v1  ;;  %v3447_v54 = vld [vmem:[%s4420_s17 + $0x14] sm:$0x3]  ;;  %s334_s17 = scalar_lea.vmem [#allocation2], %s3324_s20 }
  0x86   : > { %3749 = vmatprep.subr.bf16.mxu1 %v4205_v1  ;;  %v4748_v58 = vcombine.low %v3446_v53, %v3447_v54  ;;  %v3482_v53 = vld [vmem:[%s5031_s4 + $0x48] sm:$0x3] }
  0x88   : > { %v2389_v3 = vshrl.u32 %v4748_v58, 16  ;;  %v2445_v26 = vrot.slane %v4748_v58, 1 }
  0x8a   : > { %3722 = vmatmul.mubr.msk.bf16.vlgmr.msra.gmra.mxu0 %vm387_vm3, %v1470_v60  ;;  %v3452_v60 = vld [vmem:[%s5031_s4 + $0x4a] sm:$0x3]  ;;  %v2495_v14 = vrot.slane %v2389_v3, 1 }
  0x8b   : > { %3732 = vmatpush3.bf16.msra.mxu0 %v1582_v62  ;;  %3733 = vmatprep.mubr.msk.bf16.mxu0 %vm4207_vm2, %v4205_v1  ;;  %v2281_v62 = vor.u32 %v2280_v57, %v2279_v56  ;;  %v2886_v57 = vand.u32 %v3482_v53, %v4388_v5 }
  0x8c   : > { %3743 = vmatprep.subr.bf16.mxu0 %v4205_v1  ;;  %3740 = vmatmul.mubr.msk.bf16.vlgmr.msra.gmra.mxu1 %vm387_vm3, %v1634_v63  ;;  %v2391_v63 = vshll.u32 %v4748_v58, 16 }
  0x8d   : > { %3750 = vmatpush3.bf16.msra.mxu1 %v1746_v0  ;;  %3751 = vmatprep.mubr.msk.bf16.mxu1 %vm4207_vm2, %v4205_v1  ;;  %v2399_v0 = vand.u32 %v3452_v60, %v4388_v5 }
  0x8e   : > { %3761 = vmatprep.subr.bf16.mxu1 %v4205_v1  ;;  %v2496_v15 = vrot.slane %v2391_v63, 2 }
  0x92   : > { %3734 = vmatmul.mubr.msk.bf16.vlgmr.msra.gmra.mxu0 %vm387_vm3, %v3402_v4  ;;  %v2393_v4 = vrot.slane %v2391_v63, 1 }
  0x93   : > { %3744 = vmatpush3.bf16.msra.mxu0 %v1690_v7  ;;  %3745 = vmatprep.mubr.msk.bf16.mxu0 %vm4207_vm2, %v4205_v1  ;;  %v3456_v7 = vld [vmem:[%s5031_s4 + $0x52] sm:$0x3] }
  0x94   : > { %3755 = vmatprep.subr.bf16.mxu0 %v4205_v1  ;;  %3752 = vmatmul.mubr.msk.bf16.vlgmr.msra.gmra.mxu1 %vm387_vm3, %v3413_v9  ;;  %v2394_v9 = vor.u32 %v2393_v4, %v2389_v3 }
  0x95   : > { %3762 = vmatpush3.bf16.msra.mxu1 %v1854_v10  ;;  %3763 = vmatprep.mubr.msk.bf16.mxu1 %vm4207_vm2, %v4205_v1  ;;  %v2502_v10 = vand.u32 %v3456_v7, %v4388_v5 }
  0x96   : > { %3773 = vmatprep.subr.bf16.mxu1 %v4205_v1 }
  0x9a   : > { %3746 = vmatmul.mubr.msk.bf16.vlgmr.msra.gmra.mxu0 %vm387_vm3, %v1685_v16  ;;  %v4787_v16 = vcombine.low %v2547_v11, %v2548_v12 }
  0x9b   : > { %3756 = vmatpush3.bf16.msra.mxu0 %v1803_v19  ;;  %3757 = vmatprep.mubr.msk.bf16.mxu0 %vm4207_vm2, %v4205_v1  ;;  %v2450_v19 = vand.u32 %v3454_v13, %v4388_v5 }
  0x9c   : > { %3767 = vmatprep.subr.bf16.mxu0 %v4205_v1  ;;  %3764 = vmatmul.mubr.msk.bf16.vlgmr.msra.gmra.mxu1 %vm387_vm3, %v1849_v20  ;;  %v2497_v20 = vor.u32 %v2496_v15, %v2495_v14  ;;  %v2607_v21 = vshll.u32 %v4787_v16, 16  ;;  %v2605_v24 = vshrl.u32 %v4787_v16, 16 }
  0x9d   : > { %3774 = vmatpush3.bf16.msra.mxu1 %v1967_v22  ;;  %3775 = vmatprep.mubr.msk.bf16.mxu1 %vm4207_vm2, %v4205_v1  ;;  %v2615_v22 = vand.u32 %v3463_v18, %v4388_v5 }
  0x9e   : > { %3785 = vmatprep.subr.bf16.mxu1 %v4205_v1  ;;  %v2609_v25 = vrot.slane %v2607_v21, 1 }
  0xa0   : > { %v2610_v29 = vor.u32 %v2609_v25, %v2605_v24 }
  0xa2   : > { %3758 = vmatmul.mubr.msk.bf16.vlgmr.msra.gmra.mxu0 %vm387_vm3, %v1798_v28  ;;  %v2558_v28 = vand.u32 %v3460_v23, %v4388_v5 }
  0xa3   : > { %3768 = vmatpush3.bf16.msra.mxu0 %v1910_v30  ;;  %3769 = vmatprep.mubr.msk.bf16.mxu0 %vm4207_vm2, %v4205_v1  ;;  %v2722_v30 = vand.u32 %v3471_v27, %v4388_v5 }
  0xa4   : > { %3779 = vmatprep.subr.bf16.mxu0 %v4205_v1  ;;  %3776 = vmatmul.mubr.msk.bf16.vlgmr.msra.gmra.mxu1 %vm387_vm3, %v1962_v31  ;;  %v3465_v31 = vld [vmem:[%s5031_s4 + $0x18] sm:$0x3] }
  0xa5   : > { %3786 = vmatpush3.bf16.msra.mxu1 %v2070_v32  ;;  %3787 = vmatprep.mubr.msk.bf16.mxu1 %vm4207_vm2, %v4205_v1  ;;  %v3468_v32 = vld [vmem:[%s4500_s16 + $0x8] sm:$0xf]  ;;  %v2666_v35 = vand.u32 %v3465_v31, %v4388_v5 }
  0xa6   : > { %3797 = vmatprep.subr.bf16.mxu1 %v4205_v1  ;;  %v3470_v37 = vcombine.low %v3468_v32, %v3468_v32 }
  0xaa   : > { %3770 = vmatmul.mubr.msk.bf16.vlgmr.msra.gmra.mxu0 %vm387_vm3, %v3422_v39  ;;  %v3479_v39 = vld [vmem:[%s4500_s16 + $0x10] sm:$0xf]  ;;  %s4882_s16 = scalar_lea.vmem [#allocation4], %s5062_s12 }
  0xab   : > { %3780 = vmatpush3.bf16.msra.mxu0 %v2018_v41  ;;  %3781 = vmatprep.mubr.msk.bf16.mxu0 %vm4207_vm2, %v4205_v1  ;;  %v3473_v41 = vcombine.low %v3468_v32, %v3469_v36  ;;  %v3484_v43 = vcombine.low %v3479_v39, %v3480_v40  ;;  %v3481_v60 = vcombine.low %v3479_v39, %v3479_v39 }
  0xac   : > { %3791 = vmatprep.subr.bf16.mxu0 %v4205_v1  ;;  %3788 = vmatmul.mubr.msk.bf16.vlgmr.msra.gmra.mxu1 %vm387_vm3, %v2065_v42  ;;  %v3474_v42 = vld [vmem:[%s5031_s4 + $0x30] sm:$0x3] }
  0xad   : > { %3798 = vmatpush3.bf16.msra.mxu1 %v2183_v44  ;;  %3799 = vmatprep.mubr.msk.bf16.mxu1 %vm4207_vm2, %v4205_v1  ;;  %v2661_v44 = vrot.slane %v4787_v16, 1  ;;  %v2771_v45 = vshll.u32 %v3473_v41, 16  ;;  %v2779_v47 = vand.u32 %v3474_v42, %v4388_v5  ;;  %v2935_v49 = vshll.u32 %v3484_v43, 16 }
  0xae   : > { %3809 = vmatprep.subr.bf16.mxu1 %v4205_v1  ;;  %v2933_v54 = vshrl.u32 %v3484_v43, 16  ;;  %v2989_v63 = vrot.slane %v3484_v43, 1 }
  0xaf   : > { %v2937_v55 = vrot.slane %v2935_v49, 1 }
  0xb1   : > { %v2938_v58 = vor.u32 %v2937_v55, %v2933_v54 }
  0xb2   : > { %3782 = vmatmul.mubr.msk.bf16.vlgmr.msra.gmra.mxu0 %vm387_vm3, %v2013_v48  ;;  %v2825_v48 = vrot.slane %v3473_v41, 1 }
  0xb3   : > { %3792 = vmatpush3.bf16.msra.mxu0 %v2126_v50  ;;  %3793 = vmatprep.mubr.msk.bf16.mxu0 %vm4207_vm2, %v4205_v1  ;;  %v2943_v50 = vand.u32 %v3485_v46, %v4388_v5 }
  0xb4   : > { %3803 = vmatprep.subr.bf16.mxu0 %v4205_v1  ;;  %3800 = vmatmul.mubr.msk.bf16.vlgmr.msra.gmra.mxu1 %vm387_vm3, %v2178_v51  ;;  %v2769_v51 = vshrl.u32 %v3473_v41, 16 }
  0xb5   : > { %3810 = vmatpush3.bf16.msra.mxu1 %v2286_v52  ;;  %3811 = vmatprep.mubr.msk.bf16.mxu1 %vm4207_vm2, %v4205_v1  ;;  %v2773_v52 = vrot.slane %v2771_v45, 1 }
  0xb6   : > { %3821 = vmatprep.subr.bf16.mxu1 %v4205_v1 }
  0xb7   : > { %v2774_v56 = vor.u32 %v2773_v52, %v2769_v51 }
  0xba   : > { %3794 = vmatmul.mubr.msk.bf16.vlgmr.msra.gmra.mxu0 %vm387_vm3, %v3435_v59  ;;  %v3487_v59 = vld [vmem:[%s5031_s4 + $0x50] sm:$0x3] }
  0xbb   : > { %3804 = vmatpush3.bf16.msra.mxu0 %v2234_v61  ;;  %3805 = vmatprep.mubr.msk.bf16.mxu0 %vm4207_vm2, %v4205_v1  ;;  %v2994_v61 = vand.u32 %v3487_v59, %v4388_v5 }
  0xbc   : > { %3815 = vmatprep.subr.bf16.mxu0 %v4205_v1  ;;  %3812 = vmatmul.mubr.msk.bf16.vlgmr.msra.gmra.mxu1 %vm387_vm3, %v2281_v62 }
  0xbd   : > { %3822 = vmatpush3.bf16.msra.mxu1 %v2399_v0  ;;  %3823 = vmatprep.mubr.msk.bf16.mxu1 %vm4207_vm2, %v4205_v1 }
  0xbe   : > { %3833 = vmatprep.subr.bf16.mxu1 %v4205_v1 }
  0xc2   : > { %3806 = vmatmul.mubr.msk.bf16.vlgmr.msra.gmra.mxu0 %vm387_vm3, %v2229_v6 }
  0xc3   : > { %3816 = vmatpush3.bf16.msra.mxu0 %v2342_v8  ;;  %3817 = vmatprep.mubr.msk.bf16.mxu0 %vm4207_vm2, %v4205_v1 }
  0xc4   : > { %3827 = vmatprep.subr.bf16.mxu0 %v4205_v1  ;;  %3824 = vmatmul.mubr.msk.bf16.vlgmr.msra.gmra.mxu1 %vm387_vm3, %v2394_v9 }
  0xc5   : > { %3834 = vmatpush3.bf16.msra.mxu1 %v2502_v10  ;;  %3835 = vmatprep.mubr.msk.bf16.mxu1 %vm4207_vm2, %v4205_v1 }
  0xc6   : > { %3845 = vmatprep.subr.bf16.mxu1 %v4205_v1 }
  0xca   : > { %3818 = vmatmul.mubr.msk.bf16.vlgmr.msra.gmra.mxu0 %vm387_vm3, %v3448_v17 }
  0xcb   : > { %3828 = vmatpush3.bf16.msra.mxu0 %v2450_v19  ;;  %3829 = vmatprep.mubr.msk.bf16.mxu0 %vm4207_vm2, %v4205_v1 }
  0xcc   : > { %3839 = vmatprep.subr.bf16.mxu0 %v4205_v1  ;;  %3836 = vmatmul.mubr.msk.bf16.vlgmr.msra.gmra.mxu1 %vm387_vm3, %v2497_v20 }
  0xcd   : > { %3846 = vmatpush3.bf16.msra.mxu1 %v2615_v22  ;;  %3847 = vmatprep.mubr.msk.bf16.mxu1 %vm4207_vm2, %v4205_v1 }
  0xce   : > { %3857 = vmatprep.subr.bf16.mxu1 %v4205_v1 }
  0xd2   : > { %3830 = vmatmul.mubr.msk.bf16.vlgmr.msra.gmra.mxu0 %vm387_vm3, %v2445_v26 }
  0xd3   : > { %3840 = vmatpush3.bf16.msra.mxu0 %v2558_v28  ;;  %3841 = vmatprep.mubr.msk.bf16.mxu0 %vm4207_vm2, %v4205_v1 }
  0xd4   : > { %3851 = vmatprep.subr.bf16.mxu0 %v4205_v1  ;;  %3848 = vmatmul.mubr.msk.bf16.vlgmr.msra.gmra.mxu1 %vm387_vm3, %v2610_v29 }
  0xd5   : > { %3858 = vmatpush3.bf16.msra.mxu1 %v2722_v30  ;;  %3859 = vmatprep.mubr.msk.bf16.mxu1 %vm4207_vm2, %v4205_v1 }
  0xd6   : > { %3869 = vmatprep.subr.bf16.mxu1 %v4205_v1 }
  0xda   : > { %3842 = vmatmul.mubr.msk.bf16.vlgmr.msra.gmra.mxu0 %vm387_vm3, %v3459_v33 }
  0xdb   : > { %3852 = vmatpush3.bf16.msra.mxu0 %v2666_v35  ;;  %3853 = vmatprep.mubr.msk.bf16.mxu0 %vm4207_vm2, %v4205_v1 }
  0xdc   : > { %3863 = vmatprep.subr.bf16.mxu0 %v4205_v1  ;;  %3860 = vmatmul.mubr.msk.bf16.vlgmr.msra.gmra.mxu1 %vm387_vm3, %v3470_v37 }
  0xdd   : > { %3870 = vmatpush3.bf16.msra.mxu1 %v2830_v38  ;;  %3871 = vmatprep.mubr.msk.bf16.mxu1 %vm4207_vm2, %v4205_v1 }
  0xde   : > { %3881 = vmatprep.subr.bf16.mxu1 %v4205_v1 }
  0xe2   : > { %3854 = vmatmul.mubr.msk.bf16.vlgmr.msra.gmra.mxu0 %vm387_vm3, %v2661_v44 }
  0xe3   : > { %3864 = vmatpush3.bf16.msra.mxu0 %v2779_v47  ;;  %3865 = vmatprep.mubr.msk.bf16.mxu0 %vm4207_vm2, %v4205_v1 }
  0xe4   : > { %3875 = vmatprep.subr.bf16.mxu0 %v4205_v1  ;;  %3872 = vmatmul.mubr.msk.bf16.vlgmr.msra.gmra.mxu1 %vm387_vm3, %v2825_v48 }
  0xe5   : > { %3882 = vmatpush3.bf16.msra.mxu1 %v2943_v50  ;;  %3883 = vmatprep.mubr.msk.bf16.mxu1 %vm4207_vm2, %v4205_v1 }
  0xea   : > { %3866 = vmatmul.mubr.msk.bf16.vlgmr.msra.gmra.mxu0 %vm387_vm3, %v2774_v56 }
  0xeb   : > { %3876 = vmatpush3.bf16.msra.mxu0 %v2886_v57  ;;  %3877 = vmatprep.mubr.msk.bf16.mxu0 %vm4207_vm2, %v4205_v1 }
  0xec   : > { %3887 = vmatprep.subr.bf16.mxu0 %v4205_v1  ;;  %3884 = vmatmul.mubr.msk.bf16.vlgmr.msra.gmra.mxu1 %vm387_vm3, %v2938_v58 }
  0xf2   : > { %3878 = vmatmul.mubr.msk.bf16.vlgmr.msra.gmra.mxu0 %vm387_vm3, %v3481_v60 }
  0xf3   : > { %3888 = vmatpush3.bf16.msra.mxu0 %v2994_v61  ;;  %3889 = vmatprep.mubr.msk.bf16.mxu0 %vm4207_vm2, %v4205_v1 }
  0xf4   : > { %v478_v62 = vpop.f32.mrf.mxu1 }
  0xf6   : > { %v3609_v0 = vpop.f32.mrf.mxu1 }
  0xf8   : > { %v481_v2 = vpop.f32.mrf.mxu1 }
  0xfa   : > { %v432_v3 = vpop.f32.mrf.mxu0  ;;  %3890 = vmatmul.mubr.msk.bf16.vlgmr.msra.gmra.mxu0 %vm387_vm3, %v2989_v63  ;;  %v3610_v4 = vpop.f32.mrf.mxu1 }
  0xfb   : > { %v479_v6 = vadd.f32 %v478_v62, %v432_v3 }
  0xfc   : > { %v3603_v7 = vpop.f32.mrf.mxu0  ;;  %v580_v8 = vpop.f32.mrf.mxu1 }
  0xfe   : > { %v435_v9 = vpop.f32.mrf.mxu0  ;;  %v3621_v10 = vpop.f32.mrf.mxu1 }
 0x100   : > { %v3604_v5 = vpop.f32.mrf.mxu0  ;;  %v583_v11 = vpop.f32.mrf.mxu1 }
 0x102   : > { %v528_v12 = vpop.f32.mrf.mxu0  ;;  %v3622_v13 = vpop.f32.mrf.mxu1 }
 0x103   : > { %v534_v14 = vadd.f32 %v528_v12, %v479_v6 }
 0x104   : > { %v3615_v15 = vpop.f32.mrf.mxu0  ;;  %v695_v1 = vpop.f32.mrf.mxu1 }
 0x105   : > { %v586_v16 = vadd.f32 %v580_v8, %v534_v14 }
 0x106   : > { %v531_v17 = vpop.f32.mrf.mxu0  ;;  %v3633_v18 = vpop.f32.mrf.mxu1 }
 0x108   : > { %v3616_v19 = vpop.f32.mrf.mxu0  ;;  %v698_v20 = vpop.f32.mrf.mxu1 }
 0x10a   : > { %v638_v21 = vpop.f32.mrf.mxu0  ;;  %v3634_v22 = vpop.f32.mrf.mxu1 }
 0x10b   : > { %v644_v23 = vadd.f32 %v638_v21, %v586_v16 }
 0x10c   : > { %v3627_v24 = vpop.f32.mrf.mxu0  ;;  %v798_v25 = vpop.f32.mrf.mxu1 }
 0x10d   : > { %v701_v26 = vadd.f32 %v695_v1, %v644_v23 }
 0x10e   : > { %v641_v27 = vpop.f32.mrf.mxu0  ;;  %v3645_v28 = vpop.f32.mrf.mxu1 }
 0x110   : > { %v3628_v29 = vpop.f32.mrf.mxu0  ;;  %v801_v30 = vpop.f32.mrf.mxu1 }
 0x112   : > { %v746_v31 = vpop.f32.mrf.mxu0  ;;  %v3646_v32 = vpop.f32.mrf.mxu1 }
 0x113   : > { %v752_v33 = vadd.f32 %v746_v31, %v701_v26 }
 0x114   : > { %v3639_v34 = vpop.f32.mrf.mxu0  ;;  %v913_v35 = vpop.f32.mrf.mxu1 }
 0x115   : > { %v804_v36 = vadd.f32 %v798_v25, %v752_v33 }
 0x116   : > { %v749_v37 = vpop.f32.mrf.mxu0  ;;  %v3657_v38 = vpop.f32.mrf.mxu1 }
 0x118   : > { %v3640_v39 = vpop.f32.mrf.mxu0  ;;  %v916_v40 = vpop.f32.mrf.mxu1 }
 0x11a   : > { %v856_v41 = vpop.f32.mrf.mxu0  ;;  %v3658_v42 = vpop.f32.mrf.mxu1 }
 0x11b   : > { %v862_v43 = vadd.f32 %v856_v41, %v804_v36 }
 0x11c   : > { %v3651_v44 = vpop.f32.mrf.mxu0  ;;  %v1016_v45 = vpop.f32.mrf.mxu1 }
 0x11d   : > { %v919_v46 = vadd.f32 %v913_v35, %v862_v43 }
 0x11e   : > { %v859_v47 = vpop.f32.mrf.mxu0  ;;  %v3669_v48 = vpop.f32.mrf.mxu1 }
 0x120   : > { %v3652_v49 = vpop.f32.mrf.mxu0  ;;  %v1019_v50 = vpop.f32.mrf.mxu1 }
 0x122   : > { %v964_v51 = vpop.f32.mrf.mxu0  ;;  %v3670_v52 = vpop.f32.mrf.mxu1 }
 0x123   : > { %v970_v53 = vadd.f32 %v964_v51, %v919_v46 }
 0x124   : > { %v3663_v54 = vpop.f32.mrf.mxu0  ;;  %v1131_v55 = vpop.f32.mrf.mxu1 }
 0x125   : > { %v1022_v56 = vadd.f32 %v1016_v45, %v970_v53 }
 0x126   : > { %v967_v57 = vpop.f32.mrf.mxu0  ;;  %v3681_v58 = vpop.f32.mrf.mxu1 }
 0x128   : > { %v3664_v59 = vpop.f32.mrf.mxu0  ;;  %v1134_v60 = vpop.f32.mrf.mxu1 }
 0x12a   : > { %v1074_v61 = vpop.f32.mrf.mxu0  ;;  %v3682_v62 = vpop.f32.mrf.mxu1 }
 0x12b   : > { %v1080_v63 = vadd.f32 %v1074_v61, %v1022_v56 }
 0x12c   : > { %v3675_v0 = vpop.f32.mrf.mxu0  ;;  %v1234_v2 = vpop.f32.mrf.mxu1 }
 0x12d   : > { %v1137_v3 = vadd.f32 %v1131_v55, %v1080_v63 }
 0x12e   : > { %v1077_v4 = vpop.f32.mrf.mxu0  ;;  %v3693_v6 = vpop.f32.mrf.mxu1 }
 0x130   : > { %v3676_v7 = vpop.f32.mrf.mxu0  ;;  %v1237_v8 = vpop.f32.mrf.mxu1 }
 0x132   : > { %v1182_v9 = vpop.f32.mrf.mxu0  ;;  %v3694_v10 = vpop.f32.mrf.mxu1 }
 0x133   : > { %v1188_v5 = vadd.f32 %v1182_v9, %v1137_v3 }
 0x134   : > { %v3687_v11 = vpop.f32.mrf.mxu0  ;;  %v1347_v12 = vpop.f32.mrf.mxu1 }
 0x135   : > { %v1240_v13 = vadd.f32 %v1234_v2, %v1188_v5 }
 0x136   : > { %v1185_v14 = vpop.f32.mrf.mxu0  ;;  %v3705_v15 = vpop.f32.mrf.mxu1 }
 0x138   : > { %v3688_v1 = vpop.f32.mrf.mxu0  ;;  %v1350_v16 = vpop.f32.mrf.mxu1 }
 0x13a   : > { %v1290_v17 = vpop.f32.mrf.mxu0  ;;  %v3706_v18 = vpop.f32.mrf.mxu1 }
 0x13b   : > { %v1296_v19 = vadd.f32 %v1290_v17, %v1240_v13 }
 0x13c   : > { %v3699_v20 = vpop.f32.mrf.mxu0  ;;  %v1454_v21 = vpop.f32.mrf.mxu1 }
 0x13d   : > { %v1353_v22 = vadd.f32 %v1347_v12, %v1296_v19 }
 0x13e   : > { %v1293_v23 = vpop.f32.mrf.mxu0  ;;  %v3717_v24 = vpop.f32.mrf.mxu1 }
 0x140   : > { %v3700_v25 = vpop.f32.mrf.mxu0  ;;  %v1457_v26 = vpop.f32.mrf.mxu1 }
 0x142   : > { %v1398_v27 = vpop.f32.mrf.mxu0  ;;  %v3718_v28 = vpop.f32.mrf.mxu1 }
 0x143   : > { %v1404_v29 = vadd.f32 %v1398_v27, %v1353_v22 }
 0x144   : > { %v3711_v30 = vpop.f32.mrf.mxu0  ;;  %v1562_v31 = vpop.f32.mrf.mxu1 }
 0x145   : > { %v1460_v32 = vadd.f32 %v1454_v21, %v1404_v29 }
 0x146   : > { %v1401_v33 = vpop.f32.mrf.mxu0  ;;  %v3729_v34 = vpop.f32.mrf.mxu1 }
 0x148   : > { %v3712_v35 = vpop.f32.mrf.mxu0  ;;  %v1565_v36 = vpop.f32.mrf.mxu1 }
 0x14a   : > { %v1511_v37 = vpop.f32.mrf.mxu0  ;;  %v3730_v38 = vpop.f32.mrf.mxu1 }
 0x14b   : > { %v1517_v39 = vadd.f32 %v1511_v37, %v1460_v32 }
 0x14c   : > { %v3723_v40 = vpop.f32.mrf.mxu0  ;;  %v1675_v41 = vpop.f32.mrf.mxu1 }
 0x14d   : > { %v1568_v42 = vadd.f32 %v1562_v31, %v1517_v39 }
 0x14e   : > { %v1514_v43 = vpop.f32.mrf.mxu0  ;;  %v3741_v44 = vpop.f32.mrf.mxu1 }
 0x150   : > { %v3724_v45 = vpop.f32.mrf.mxu0  ;;  %v1678_v46 = vpop.f32.mrf.mxu1 }
 0x152   : > { %v1618_v47 = vpop.f32.mrf.mxu0  ;;  %v3742_v48 = vpop.f32.mrf.mxu1 }
 0x153   : > { %v1624_v12 = vadd.f32 %v1618_v47, %v1568_v42 }
 0x154   : > { %v3735_v49 = vpop.f32.mrf.mxu0  ;;  %v1782_v50 = vpop.f32.mrf.mxu1 }
 0x155   : > { %v1681_v16 = vadd.f32 %v1675_v41, %v1624_v12 }
 0x156   : > { %v1621_v51 = vpop.f32.mrf.mxu0  ;;  %v3753_v52 = vpop.f32.mrf.mxu1 }
 0x158   : > { %v3736_v53 = vpop.f32.mrf.mxu0  ;;  %v1785_v54 = vpop.f32.mrf.mxu1 }
 0x15a   : > { %v1726_v55 = vpop.f32.mrf.mxu0  ;;  %v3754_v56 = vpop.f32.mrf.mxu1 }
 0x15b   : > { %v1732_v19 = vadd.f32 %v1726_v55, %v1681_v16 }
 0x15c   : > { %v3747_v57 = vpop.f32.mrf.mxu0  ;;  %v1890_v58 = vpop.f32.mrf.mxu1 }
 0x15d   : > { %v1788_v24 = vadd.f32 %v1782_v50, %v1732_v19 }
 0x15e   : > { %v1729_v59 = vpop.f32.mrf.mxu0  ;;  %v3765_v60 = vpop.f32.mrf.mxu1 }
 0x160   : > { %v3748_v61 = vpop.f32.mrf.mxu0  ;;  %v1893_v62 = vpop.f32.mrf.mxu1 }
 0x162   : > { %v1839_v63 = vpop.f32.mrf.mxu0  ;;  %v3766_v0 = vpop.f32.mrf.mxu1 }
 0x163   : > { %v1845_v27 = vadd.f32 %v1839_v63, %v1788_v24 }
 0x164   : > { %v3759_v2 = vpop.f32.mrf.mxu0  ;;  %v2003_v3 = vpop.f32.mrf.mxu1 }
 0x165   : > { %v1896_v32 = vadd.f32 %v1890_v58, %v1845_v27 }
 0x166   : > { %v1842_v4 = vpop.f32.mrf.mxu0  ;;  %v3777_v6 = vpop.f32.mrf.mxu1 }
 0x168   : > { %v3760_v7 = vpop.f32.mrf.mxu0  ;;  %v2006_v8 = vpop.f32.mrf.mxu1 }
 0x16a   : > { %v1946_v9 = vpop.f32.mrf.mxu0  ;;  %v3778_v10 = vpop.f32.mrf.mxu1 }
 0x16b   : > { %v1952_v35 = vadd.f32 %v1946_v9, %v1896_v32 }
 0x16c   : > { %v3771_v5 = vpop.f32.mrf.mxu0  ;;  %v2106_v11 = vpop.f32.mrf.mxu1 }
 0x16d   : > { %v2009_v40 = vadd.f32 %v2003_v3, %v1952_v35 }
 0x16e   : > { %v1949_v13 = vpop.f32.mrf.mxu0  ;;  %v3789_v14 = vpop.f32.mrf.mxu1 }
 0x170   : > { %v3772_v15 = vpop.f32.mrf.mxu0  ;;  %v2109_v1 = vpop.f32.mrf.mxu1 }
 0x172   : > { %v2054_v17 = vpop.f32.mrf.mxu0  ;;  %v3790_v18 = vpop.f32.mrf.mxu1 }
 0x173   : > { %v2060_v43 = vadd.f32 %v2054_v17, %v2009_v40 }
 0x174   : > { %v3783_v20 = vpop.f32.mrf.mxu0  ;;  %v2219_v21 = vpop.f32.mrf.mxu1 }
 0x175   : > { %v2112_v48 = vadd.f32 %v2106_v11, %v2060_v43 }
 0x176   : > { %v2057_v22 = vpop.f32.mrf.mxu0  ;;  %v3801_v23 = vpop.f32.mrf.mxu1 }
 0x178   : > { %v3784_v25 = vpop.f32.mrf.mxu0  ;;  %v2222_v26 = vpop.f32.mrf.mxu1 }
 0x17a   : > { %v2162_v28 = vpop.f32.mrf.mxu0  ;;  %v3802_v29 = vpop.f32.mrf.mxu1 }
 0x17b   : > { %v2168_v51 = vadd.f32 %v2162_v28, %v2112_v48 }
 0x17c   : > { %v3795_v30 = vpop.f32.mrf.mxu0  ;;  %v2322_v31 = vpop.f32.mrf.mxu1 }
 0x17d   : > { %v2225_v56 = vadd.f32 %v2219_v21, %v2168_v51 }
 0x17e   : > { %v2165_v33 = vpop.f32.mrf.mxu0  ;;  %v3813_v34 = vpop.f32.mrf.mxu1 }
 0x180   : > { %v3796_v36 = vpop.f32.mrf.mxu0  ;;  %v2325_v37 = vpop.f32.mrf.mxu1 }
 0x182   : > { %v2270_v38 = vpop.f32.mrf.mxu0  ;;  %v3814_v39 = vpop.f32.mrf.mxu1 }
 0x183   : > { %v2276_v59 = vadd.f32 %v2270_v38, %v2225_v56 }
 0x184   : > { %v3807_v41 = vpop.f32.mrf.mxu0  ;;  %v2435_v42 = vpop.f32.mrf.mxu1 }
 0x185   : > { %v2328_v0 = vadd.f32 %v2322_v31, %v2276_v59 }
 0x186   : > { %v2273_v44 = vpop.f32.mrf.mxu0  ;;  %v3825_v45 = vpop.f32.mrf.mxu1 }
 0x188   : > { %v3808_v46 = vpop.f32.mrf.mxu0  ;;  %v2438_v47 = vpop.f32.mrf.mxu1 }
 0x18a   : > { %v2378_v49 = vpop.f32.mrf.mxu0  ;;  %v3826_v50 = vpop.f32.mrf.mxu1 }
 0x18b   : > { %v2384_v4 = vadd.f32 %v2378_v49, %v2328_v0 }
 0x18c   : > { %v3819_v52 = vpop.f32.mrf.mxu0  ;;  %v2538_v53 = vpop.f32.mrf.mxu1 }
 0x18d   : > { %v2441_v10 = vadd.f32 %v2435_v42, %v2384_v4 }
 0x18e   : > { %v2381_v54 = vpop.f32.mrf.mxu0  ;;  %v3837_v55 = vpop.f32.mrf.mxu1 }
 0x190   : > { %v3820_v57 = vpop.f32.mrf.mxu0  ;;  %v2541_v58 = vpop.f32.mrf.mxu1 }
 0x192   : > { %v2486_v60 = vpop.f32.mrf.mxu0  ;;  %v3838_v61 = vpop.f32.mrf.mxu1 }
 0x193   : > { %v2492_v12 = vadd.f32 %v2486_v60, %v2441_v10 }
 0x194   : > { %v3831_v62 = vpop.f32.mrf.mxu0  ;;  %v2651_v63 = vpop.f32.mrf.mxu1 }
 0x195   : > { %v2544_v16 = vadd.f32 %v2538_v53, %v2492_v12 }
 0x196   : > { %v2489_v2 = vpop.f32.mrf.mxu0  ;;  %v3849_v3 = vpop.f32.mrf.mxu1 }
 0x198   : > { %v3832_v6 = vpop.f32.mrf.mxu0  ;;  %v2654_v7 = vpop.f32.mrf.mxu1 }
 0x19a   : > { %v2594_v8 = vpop.f32.mrf.mxu0  ;;  %v3850_v9 = vpop.f32.mrf.mxu1 }
 0x19b   : > { %v2600_v19 = vadd.f32 %v2594_v8, %v2544_v16 }
 0x19c   : > { %v3843_v5 = vpop.f32.mrf.mxu0  ;;  %v2758_v11 = vpop.f32.mrf.mxu1 }
 0x19d   : > { %v2657_v24 = vadd.f32 %v2651_v63, %v2600_v19 }
 0x19e   : > { %v2597_v13 = vpop.f32.mrf.mxu0  ;;  %v3861_v14 = vpop.f32.mrf.mxu1 }
 0x1a0   : > { %v3844_v15 = vpop.f32.mrf.mxu0  ;;  %v2761_v1 = vpop.f32.mrf.mxu1 }
 0x1a2   : > { %v2702_v17 = vpop.f32.mrf.mxu0  ;;  %v3862_v18 = vpop.f32.mrf.mxu1 }
 0x1a3   : > { %v2708_v27 = vadd.f32 %v2702_v17, %v2657_v24 }
 0x1a4   : > { %v3855_v20 = vpop.f32.mrf.mxu0  ;;  %v2866_v21 = vpop.f32.mrf.mxu1 }
 0x1a5   : > { %v2764_v32 = vadd.f32 %v2758_v11, %v2708_v27 }
 0x1a6   : > { %v2705_v22 = vpop.f32.mrf.mxu0  ;;  %v3873_v23 = vpop.f32.mrf.mxu1 }
 0x1a8   : > { %v3856_v25 = vpop.f32.mrf.mxu0  ;;  %v2869_v26 = vpop.f32.mrf.mxu1 }
 0x1aa   : > { %v2815_v28 = vpop.f32.mrf.mxu0  ;;  %v3874_v29 = vpop.f32.mrf.mxu1 }
 0x1ab   : > { %v2821_v35 = vadd.f32 %v2815_v28, %v2764_v32 }
 0x1ac   : > { %v3867_v30 = vpop.f32.mrf.mxu0  ;;  %v2979_v31 = vpop.f32.mrf.mxu1 }
 0x1ad   : > { %v2872_v40 = vadd.f32 %v2866_v21, %v2821_v35 }
 0x1ae   : > { %v2818_v33 = vpop.f32.mrf.mxu0  ;;  %v3885_v34 = vpop.f32.mrf.mxu1 }
 0x1b0   : > { %v3868_v36 = vpop.f32.mrf.mxu0  ;;  %v2982_v37 = vpop.f32.mrf.mxu1 }
 0x1b2   : > { %v2922_v38 = vpop.f32.mrf.mxu0  ;;  %v3886_v39 = vpop.f32.mrf.mxu1 }
 0x1b3   : > { %v2928_v42 = vadd.f32 %v2922_v38, %v2872_v40 }
 0x1b4   : > { %v3879_v41 = vpop.f32.mrf.mxu0 }
 0x1b5   : > { %v2985_v45 = vadd.f32 %v2979_v31, %v2928_v42 }
 0x1b6   : > { %v2925_v43 = vpop.f32.mrf.mxu0 }
 0x1b8   : > { %v3880_v44 = vpop.f32.mrf.mxu0 }
 0x1ba   : > { %v3030_v46 = vpop.f32.mrf.mxu0 }
 0x1bb   : > { %v3036_v47 = vadd.f32 %v3030_v46, %v2985_v45 }
 0x1bc   : > { %v3891_v48 = vpop.f32.mrf.mxu0  ;;  %3043 = sbr.rel (%p3489_p5) target bundleno = 451 (0x1c3), region = 44 }
 0x1bd   : > { %v3037_v49 = vpack.c.bf16 %v3036_v47, %v3036_v47 }
 0x1be   : > { %v3033_v50 = vpop.f32.mrf.mxu0 }
 0x1bf   : > { %3039 = vst.msk [vmem:[%s334_s17] sm:$0xf] %vm3038_vm4, %v3037_v49 }
 0x1c0   : > { %v3892_v51 = vpop.f32.mrf.mxu0 }
 0x1c1   : > { %vm3044_vm5 = vcmask 516096   ;;  %v4208_v52 = vmov 0.0  }
 0x1c2   : > { %3045 = vst.msk [vmem:[%s4882_s16] sm:$0x1] %vm3044_vm5, %v4208_v52  ;;  %3046 = vst.msk [vmem:[%s4886_s18] sm:$0x1] %vm3044_vm5, %v4208_v52 }
 0x1c3 PF: > { %vm3048_vm6 = vcmask 523264   ;;  %v3060_v53 = vmul.f32 %v3036_v47, %v3036_v47  ;;  %s3491_s24 = sshll.u32 %s4191_s8, 3  ;;  %s3094_s23 = sshll.u32 %s334_s17, 4  ;;  %s4893_s23 = int_to_ptr.vmem [resolvable:$true] %s3094_s23 }
 0x1c4   : > { %v3049_v54 = vsel %vm3048_vm6, %v3036_v47, 0.0  ;;  %s3090_s10 = sadd.s32 %s4187_s30, %s3491_s24  ;;  %s5064_s0 = sand.u32 1, %s4179_s28  }
 0x1c5   : > { %v3050_v55 = vrot.slane %v3049_v54, 4  ;;  %v3061_v56 = vsel %vm3048_vm6, %v3060_v53, 0.0  ;;  %s3492_s20 = sshll.u32 %s3090_s10, 6  ;;  %s3071_s1 = scalar_lea.sflag [#allocation3], %s5064_s0 }
 0x1c6   : > { %v3062_v57 = vrot.slane %v3061_v56, 4  ;;  %s3092_s15 = scalar_lea.hbm %s5032_s5, %s3492_s20  ;;  %s4031_s2 = scalar_lea.vmem %s4893_s23, 64 }
 0x1c7   : > { %v3051_v58 = vadd.f32 %v3050_v55, %v3049_v54  ;;  %p4032_p6 = scmp.ne.s32.totalorder %s4893_s23, %s4031_s2  ;;  %s4209_s30 = smov [#allocation2]  }
 0x1c8   : > { %v3063_v59 = vadd.f32 %v3062_v57, %v3061_v56  ;;  %s4035_s17 = sshll.u32 %s4209_s30, 4  ;;  %s4036_s17 = int_to_ptr.vmem [resolvable:$false] %s4035_s17 }
 0x1c9   : > { %v3052_v60 = vrot.slane %v3051_v58, 2  ;;  %p4033_p8 = pnand %p4032_p6, %p4327_p3  ;;  %s4037_s24 = scalar_lea.vmem %s4036_s17, 128 }
 0x1ca   : > { %v3064_v61 = vrot.slane %v3063_v59, 2  ;;  %p4038_p10 = scmp.lt.s32.totalorder %s4893_s23, %s4036_s17  ;;  %p4039_p11 = scmp.lt.s32.totalorder %s4037_s24, %s4031_s2 }
 0x1cb   : > { %v3053_v62 = vadd.f32 %v3052_v60, %v3051_v58  ;;  %p4034_p9 = pneg %p4033_p8 }
 0x1cc   : > { %v3065_v63 = vadd.f32 %v3064_v61, %v3063_v59  ;;  %p4040_p0 = por %p4039_p11, %p4038_p10 }
 0x1ce   : > { %p4041_p1 = pnand %p4040_p0, %p4034_p9 }
 0x1d0   : > { %4044 = shalt.err (!%p4041_p1)
}
 0x1d1   : > { %s4045_s10 = scalar_lea.hbm %s3092_s15, 64  ;;  %s4049_s12 = scalar_lea.hbm %s5032_s5, 1024 }
 0x1d2   : > { %p4046_p4 = scmp.ne.s32.totalorder %s3092_s15, %s4045_s10  ;;  %p4050_p6 = scmp.lt.s32.totalorder %s3092_s15, %s5032_s5 }
 0x1d3   : > { %p4051_p8 = scmp.lt.s32.totalorder %s4049_s12, %s4045_s10 }
 0x1d4   : > { %p4047_p2 = pnand %p4046_p4, %p4327_p3 }
 0x1d5   : > { %p4052_p13 = por %p4051_p8, %p4050_p6 }
 0x1d6   : > { %p4048_p5 = pneg %p4047_p2 }
 0x1d8   : > { %p4053_p7 = pnand %p4052_p13, %p4048_p5 }
 0x1da   : > { %4056 = shalt.err (!%p4053_p7)
}
 0x1db   : > { %3894 = dma.vmem_to_hbm [thread:$0]  (%p4327_p3), %s4893_s23, 64, %s3092_s15, %s3071_s1   ;;  %v3054_v0 = vrot.slane %v3053_v62, 1  ;;  %v3047_v2 = vld [vmem:[%s4882_s16] sm:$0x1]  ;;  %v3066_v3 = vrot.slane %v3065_v63, 1  ;;  %vm3057_vm7 = vcmask 516096  }
 0x1dc   : > { %s5065_s2 = sadd.s32 4294967295, %s4203_s11   ;;  %s3493_s3 = sshll.u32 %s4191_s8, 4  ;;  %v3059_v6 = vld [vmem:[%s4886_s18] sm:$0x1] }
 0x1dd   : > { %s4918_s30 = sand.u32 1, %s5065_s2   ;;  %s3107_s17 = sshll.u32 %s4882_s16, 4  ;;  %v3055_v4 = vadd.f32 %v3054_v0, %v3053_v62  ;;  %v3067_v7 = vadd.f32 %v3066_v3, %v3065_v63  ;;  %s4930_s17 = int_to_ptr.vmem [resolvable:$true] %s3107_s17 }
 0x1de   : > { %s3120_s19 = sshll.u32 %s4886_s18, 4  ;;  %s4928_s15 = scalar_lea.hbm %s5033_s6, %s3493_s3  ;;  %s4937_s19 = int_to_ptr.vmem [resolvable:$true] %s3120_s19 }
 0x1df   : > { %v3056_v8 = vadd.f32 %v3055_v4, %v3047_v2  ;;  %v3068_v9 = vadd.f32 %v3067_v7, %v3059_v6  ;;  %s4935_s10 = scalar_lea.hbm %s5034_s7, %s3493_s3  ;;  %s3076_s0 = scalar_lea.sflag [#allocation5], %s4918_s30 }
 0x1e0   : > { %s4057_s20 = scalar_lea.vmem %s4930_s17, 16  ;;  %s4210_s12 = smov [#allocation4]  }
 0x1e1   : > { %3058 = vst.msk [vmem:[%s4882_s16] sm:$0x1] %vm3057_vm7, %v3056_v8  ;;  %3069 = vst.msk [vmem:[%s4886_s18] sm:$0x1] %vm3057_vm7, %v3068_v9  ;;  %p4058_p3 = scmp.ne.s32.totalorder %s4930_s17, %s4057_s20  ;;  %s4061_s21 = sshll.u32 %s4210_s12, 4  ;;  %s4062_s21 = int_to_ptr.vmem [resolvable:$false] %s4061_s21 }
 0x1e2   : > { %s4063_s2 = scalar_lea.vmem %s4062_s21, 32  ;;  %p4064_p9 = scmp.lt.s32.totalorder %s4930_s17, %s4062_s21 }
 0x1e3   : > { %p4059_p7 = pnand %p4058_p3, %p4356_p12  ;;  %p4065_p10 = scmp.lt.s32.totalorder %s4063_s2, %s4057_s20 }
 0x1e5   : > { %p4060_p13 = pneg %p4059_p7  ;;  %p4066_p11 = por %p4065_p10, %p4064_p9 }
 0x1e7   : > { %p4067_p0 = pnand %p4066_p11, %p4060_p13 }
 0x1e9   : > { %4070 = shalt.err (!%p4067_p0)
}
 0x1ea   : > { %s4071_s16 = scalar_lea.hbm %s4928_s15, 16  ;;  %s4075_s24 = scalar_lea.hbm %s5033_s6, 32 }
 0x1eb   : > { %p4072_p1 = scmp.ne.s32.totalorder %s4928_s15, %s4071_s16  ;;  %p4076_p5 = scmp.lt.s32.totalorder %s4928_s15, %s5033_s6 }
 0x1ec   : > { %p4077_p6 = scmp.lt.s32.totalorder %s4075_s24, %s4071_s16 }
 0x1ed   : > { %p4073_p4 = pnand %p4072_p1, %p4356_p12 }
 0x1ee   : > { %p4078_p8 = por %p4077_p6, %p4076_p5 }
 0x1ef   : > { %p4074_p2 = pneg %p4073_p4 }
 0x1f1   : > { %p4079_p3 = pnand %p4078_p8, %p4074_p2 }
 0x1f3   : > { %4082 = shalt.err (!%p4079_p3)
}
 0x1f4   : > { %3895 = dma.vmem_to_hbm [thread:$0]  (%p4356_p12), %s4930_s17, 16, %s4928_s15, %s3076_s0  }
 0x1f5   : > { %s4083_s23 = scalar_lea.vmem %s4937_s19, 16  ;;  %s4211_s20 = smov [#allocation6]  }
 0x1f6   : > { %p4084_p7 = scmp.ne.s32.totalorder %s4937_s19, %s4083_s23  ;;  %s4087_s12 = sshll.u32 %s4211_s20, 4  ;;  %s4088_s12 = int_to_ptr.vmem [resolvable:$false] %s4087_s12 }
 0x1f7   : > { %s4089_s21 = scalar_lea.vmem %s4088_s12, 32  ;;  %p4090_p10 = scmp.lt.s32.totalorder %s4937_s19, %s4088_s12 }
 0x1f8   : > { %p4085_p13 = pnand %p4084_p7, %p4356_p12  ;;  %p4091_p11 = scmp.lt.s32.totalorder %s4089_s21, %s4083_s23 }
 0x1fa   : > { %p4086_p9 = pneg %p4085_p13  ;;  %p4092_p0 = por %p4091_p11, %p4090_p10 }
 0x1fc   : > { %p4093_p1 = pnand %p4092_p0, %p4086_p9 }
 0x1fe   : > { %4096 = shalt.err (!%p4093_p1)
}
 0x1ff   : > { %s4097_s2 = scalar_lea.hbm %s4935_s10, 16  ;;  %s4101_s16 = scalar_lea.hbm %s5034_s7, 32 }
 0x200   : > { %p4098_p4 = scmp.ne.s32.totalorder %s4935_s10, %s4097_s2  ;;  %p4102_p6 = scmp.lt.s32.totalorder %s4935_s10, %s5034_s7 }
 0x201   : > { %p4103_p8 = scmp.lt.s32.totalorder %s4101_s16, %s4097_s2 }
 0x202   : > { %p4099_p2 = pnand %p4098_p4, %p4356_p12 }
 0x203   : > { %p4104_p3 = por %p4103_p8, %p4102_p6 }
 0x204   : > { %p4100_p5 = pneg %p4099_p2 }
 0x206   : > { %p4105_p7 = pnand %p4104_p3, %p4100_p5 }
 0x208   : > { %4108 = shalt.err (!%p4105_p7)
}
 0x209   : > { %3896 = dma.vmem_to_hbm [thread:$0]  (%p4356_p12), %s4937_s19, 16, %s4935_s10, %s3076_s0  }
 0x20a PF: > { %s5066_s24 = sld [smem:[#allocation9_spill]]  ;;  %p3910_p13 = scmp.ge.s32.totalorder %s4203_s11, 2 }
 0x20b   : > { %p5067_p9 = scmp.ne.s32.totalorder %s5055_s22, 0 }
 0x20d   : > { %p3901_p10 = pnand %p3910_p13, %p5067_p9 }
 0x20f   : > { %p3902_p11 = pneg %p3901_p10 }
 0x210   : > { %s3132_s1 = sand.u32 1, %s5066_s24  }
 0x211   : > { %s3133_s8 = scalar_lea.sflag [#allocation3], %s3132_s1 }
 0x212   : > { %4154 = dma.done.wait (%p3902_p11), %s3133_s8, 64  }
 0x213   : > { %4156 = vsyncadd (%p3902_p11), %s3133_s8, 4294967232  ;;  %s5068_s23 = sadd.s32 4294967294, %s4203_s11   ;;  %p5069_p0 = scmp.ne.s32.totalorder %s5057_s27, 0 }
 0x214   : > { %s3141_s13 = sand.u32 1, %s5068_s23  }
 0x215   : > { %p3904_p1 = pnand %p3910_p13, %p5069_p0  ;;  %s3142_s30 = scalar_lea.sflag [#allocation5], %s3141_s13 }
 0x217   : > { %p3905_p4 = pneg %p3904_p1 }
 0x219   : > { %4158 = dma.done.wait (%p3905_p4), %s3142_s30, 32  }
 0x21a   : > { %4160 = vsyncadd (%p3905_p4), %s3142_s30, 4294967264  ;;  %s24_s11 = sadd.s32 1, %s4203_s11   ;;  %s5070_s30 = sld [smem:[#allocation10_spill]] }
 0x21b   : > { %p21_p12 = scmp.ge.s32.totalorder %s24_s11, 18   ;;  %s5071_s8 = sld [smem:[#allocation11_spill]] }
 0x21c   : > { %s5072_s22 = sld [smem:[#allocation12_spill]]  ;;  %s5074_s24 = smov %s4167_s25 }
 0x21d   : > { %s5073_s10 = sld [smem:[#allocation13_spill]]  ;;  %s5075_s25 = smov %s4171_s26 }
 0x21e   : > { %s5076_s26 = smov %s4361_s14  ;;  %s5077_s27 = smov %s4179_s28 }
 0x21f   : > { %s5078_s28 = smov %s4183_s29  ;;  %s5079_s29 = smov %s4364_s9 }
 0x220   :  { %23 = sbr.rel (!%p21_p12) target bundleno = 14 (0xe), region = 182 }
 0x222   : > { %s5080_s9 = smov %s5072_s22 }
 0x225   :  { %3154 = vsyncpa [#allocation3], 1 }
 0x226   :  { %3156 = vsyncpa [#allocation3 + $0x1], 1 }
 0x227   :  { %3157 = vsyncpa [#allocation5], 1 }
 0x228   :  { %3159 = vsyncpa [#allocation5 + $0x1], 1 }

</bundles_post_ra>
